<compile_context>
chip_gen: v5e
topology: v5e:2x2
jax: 0.10.0
libtpu: 0.0.40
codegen_flags: <defaults>
</compile_context>

<pallas_src>
import functools

import jax
import jax.numpy as jnp
import numpy as np
from jax.experimental import pallas as pl
from jax.experimental.pallas import tpu as pltpu


def _convlstm_kernel(x_ref, h_ref, c_ref, w_ref, b_ref,
                     h_out_ref, c_out_ref, patches_ref,
                     *, B, H, W, hidden, KH, KW, cin_x, cin_pad):
    """Single-invocation kernel (grid=(1,)), all batches handled at once.

    x_ref       : (B, cin_x,  H*W)        input, NCHW with spatial flattened
    h_ref       : (B, hidden, H*W)        current hidden state
    c_ref       : (B, hidden, H*W)        current cell state
    w_ref       : (4*hidden, KH*KW*cin_pad)  im2col weight slab
    b_ref       : (4*hidden, 1)           conv bias
    h_out_ref   : (B, hidden, H*W)
    c_out_ref   : (B, hidden, H*W)
    patches_ref : (B, KH*KW*cin_pad, H*W) VMEM scratch (im2col matrix)
    """
    HW = H * W
    f32 = jnp.float32
    ph, pw = KH // 2, KW // 2

    # Zero-init the im2col scratch once: covers both the "same" zero padding
    # (lane ranges that are never written) and the channel-pad rows.
    patches_ref[...] = jnp.zeros_like(patches_ref)

    # Lane (flattened spatial) index -> column coordinate, used for the
    # source-side masks of horizontal taps.
    col = jax.lax.broadcasted_iota(jnp.int32, (1, 1, HW), 2)
    x_id = col % W

    h_val = h_ref[...].astype(f32)            # (B, hidden, HW)
    x_val = x_ref[...].astype(f32)            # (B, cin_x,  HW)
    # Per-tap row layout inside the scratch: [h (8-aligned), x, zero pad].
    sources = ((h_val, 0, hidden), (x_val, hidden, cin_x))

    for kh in range(KH):
        for kw in range(KW):
            dy, dx = kh - ph, kw - pw
            s = dy * W + dx                   # flat-spatial shift of this tap
            tap = kh * KW + kw
            if s >= 0:
                dst0, src0, length = 0, s, HW - s
            else:
                dst0, src0, length = -s, 0, HW + s
            for val, row0, rows in sources:
                piece = val[:, :, src0:src0 + length]
                if dx != 0:
                    # Source column x feeds output column x - dx; only valid
                    # when 0 <= x - dx < W (otherwise it would wrap rows).
                    xs = x_id[:, :, src0:src0 + length]
                    valid = (xs - dx >= 0) & (xs - dx < W)
                    piece = jnp.where(valid, piece, 0.0)
                r0 = tap * cin_pad + row0
                patches_ref[:, r0:r0 + rows, dst0:dst0 + length] = piece

    w = w_ref[...]                                         # (4*hidden, K_pad)
    bias = jnp.broadcast_to(b_ref[...], (4 * hidden, HW))  # hoisted broadcast

    for b in range(B):                                     # B is tiny, unrolled
        acc = jnp.dot(w, patches_ref[b],
                      preferred_element_type=jnp.float32) + bias  # (4*hidden, HW)
        # Gate split along the (8-aligned) sublane axis: i, f, o, g.
        i_g = jax.nn.sigmoid(acc[0 * hidden:1 * hidden])
        f_g = jax.nn.sigmoid(acc[1 * hidden:2 * hidden])
        o_g = jax.nn.sigmoid(acc[2 * hidden:3 * hidden])
        g_g = jnp.tanh(acc[3 * hidden:4 * hidden])
        c_next = f_g * c_ref[b].astype(f32) + i_g * g_g
        h_next = o_g * jnp.tanh(c_next)
        # Lane-dense (256-wide) unmasked stores.
        h_out_ref[b] = h_next.astype(h_out_ref.dtype)
        c_out_ref[b] = c_next.astype(c_out_ref.dtype)


@functools.partial(jax.jit, static_argnums=(5,))
def conv_lstm_cell(x_nchw, h_nchw, c_nchw, weight_oihw, bias_vec, kernel_size):
    """Pallas ConvLSTMCell forward.  Inputs/outputs use PyTorch NCHW layout."""
    B, cin_x, H, W = x_nchw.shape
    hidden = h_nchw.shape[1]
    KH, KW = kernel_size
    cin = cin_x + hidden
    cin_pad = ((cin + 7) // 8) * 8            # 8-aligned sublane blocks per tap
    k_pad = KH * KW * cin_pad
    HW = H * W

    # Free reshapes only (NCHW is contiguous in (H, W)).
    x_flat = x_nchw.reshape(B, cin_x, HW)
    h_flat = h_nchw.reshape(B, hidden, HW)
    c_flat = c_nchw.reshape(B, hidden, HW)

    # Conv2d weight (O, I, KH, KW) -> im2col slab (O, KH*KW*cin_pad), with the
    # per-tap input channels reordered to [h, x, zero-pad] to match the
    # kernel's scratch row layout.
    w_parts = [weight_oihw[:, cin_x:, :, :], weight_oihw[:, :cin_x, :, :]]
    if cin_pad > cin:
        w_parts.append(jnp.zeros((4 * hidden, cin_pad - cin, KH, KW),
                                 weight_oihw.dtype))
    w_perm = jnp.concatenate(w_parts, axis=1)              # (O, cin_pad, KH, KW)
    w_mat = jnp.transpose(w_perm, (0, 2, 3, 1)).reshape(4 * hidden, k_pad)
    b_mat = bias_vec.reshape(4 * hidden, 1)

    kernel = functools.partial(_convlstm_kernel, B=B, H=H, W=W, hidden=hidden,
                               KH=KH, KW=KW, cin_x=cin_x, cin_pad=cin_pad)

    bytes_accessed = 4 * (x_flat.size + h_flat.size + c_flat.size
                          + w_mat.size + b_mat.size + 2 * B * hidden * HW)
    cost = pl.CostEstimate(
        flops=2 * B * HW * k_pad * 4 * hidden + 10 * B * HW * hidden,
        transcendentals=5 * B * HW * hidden,
        bytes_accessed=bytes_accessed)

    h_next, c_next = pl.pallas_call(
        kernel,
        out_shape=(jax.ShapeDtypeStruct((B, hidden, HW), x_nchw.dtype),
                   jax.ShapeDtypeStruct((B, hidden, HW), x_nchw.dtype)),
        grid=(1,),
        in_specs=[
            pl.BlockSpec((B, cin_x, HW), lambda i: (0, 0, 0)),
            pl.BlockSpec((B, hidden, HW), lambda i: (0, 0, 0)),
            pl.BlockSpec((B, hidden, HW), lambda i: (0, 0, 0)),
            pl.BlockSpec((4 * hidden, k_pad), lambda i: (0, 0)),
            pl.BlockSpec((4 * hidden, 1), lambda i: (0, 0)),
        ],
        out_specs=(pl.BlockSpec((B, hidden, HW), lambda i: (0, 0, 0)),
                   pl.BlockSpec((B, hidden, HW), lambda i: (0, 0, 0))),
        scratch_shapes=[pltpu.VMEM((B, k_pad, HW), jnp.float32)],
        compiler_params=pltpu.CompilerParams(
            dimension_semantics=("arbitrary",)),
        cost_estimate=cost,
    )(x_flat, h_flat, c_flat, w_mat, b_mat)

    # Free reshape back to NCHW.
    return (h_next.reshape(B, hidden, H, W), c_next.reshape(B, hidden, H, W))


def _reference(x, h, c, weight, bias, kernel_size):
    """Pure-JAX reference mirroring the PyTorch forward (NCHW throughout)."""
    combined = jnp.concatenate([x, h], axis=1)
    conv = jax.lax.conv_general_dilated(
        combined, weight, window_strides=(1, 1), padding="SAME",
        dimension_numbers=("NCHW", "OIHW", "NCHW"),
        precision=jax.lax.Precision.HIGHEST) + bias[None, :, None, None]
    hidden = h.shape[1]
    cc_i, cc_f, cc_o, cc_g = jnp.split(conv, 4, axis=1)
    i = jax.nn.sigmoid(cc_i)
    f = jax.nn.sigmoid(cc_f)
    o = jax.nn.sigmoid(cc_o)
    g = jnp.tanh(cc_g)
    c_next = f * c + i * g
    h_next = o * jnp.tanh(c_next)
    return h_next, c_next


if __name__ == "__main__":
    # Module config: input_dim=4, hidden_dim=8, kernel_size=(3,3), bias=True
    B, input_dim, hidden_dim, H, W = 2, 4, 8, 16, 16
    kernel_size = (3, 3)
    Cin = input_dim + hidden_dim

    key = jax.random.PRNGKey(0)
    kx, kh, kc, kw_, kb = jax.random.split(key, 5)

    x = jax.random.normal(kx, (B, input_dim, H, W), jnp.float32)
    h0 = jax.random.normal(kh, (B, hidden_dim, H, W), jnp.float32)
    c0 = jax.random.normal(kc, (B, hidden_dim, H, W), jnp.float32)

    # Conv2d parameters: weight (4*hidden, Cin, KH, KW), bias (4*hidden,)
    weight = 0.1 * jax.random.normal(
        kw_, (4 * hidden_dim, Cin, kernel_size[0], kernel_size[1]), jnp.float32)
    bias = 0.1 * jax.random.normal(kb, (4 * hidden_dim,), jnp.float32)

    h_next, c_next = conv_lstm_cell(x, h0, c0, weight, bias, kernel_size)
    jax.block_until_ready((h_next, c_next))

    h_ref, c_ref = _reference(x, h0, c0, weight, bias, kernel_size)
    np.testing.assert_allclose(np.asarray(h_next), np.asarray(h_ref),
                               rtol=2e-3, atol=2e-3)
    np.testing.assert_allclose(np.asarray(c_next), np.asarray(c_ref),
                               rtol=2e-3, atol=2e-3)

    print("KERNEL_OK")
</pallas_src>

<mosaic_0001>
module attributes {stable_mosaic.version = 11 : i64} {
  func.func @_convlstm_kernel(%arg0: i32, %arg1: memref<2x4x256xf32, #tpu.memory_space<vmem>>, %arg2: memref<2x8x256xf32, #tpu.memory_space<vmem>>, %arg3: memref<2x8x256xf32, #tpu.memory_space<vmem>>, %arg4: memref<32x144xf32, #tpu.memory_space<vmem>>, %arg5: memref<32x1xf32, #tpu.memory_space<vmem>>, %arg6: memref<2x8x256xf32, #tpu.memory_space<vmem>>, %arg7: memref<2x8x256xf32, #tpu.memory_space<vmem>>, %arg8: memref<2x144x256xf32, #tpu.memory_space<vmem>>) attributes {dimension_semantics = [#tpu.dimension_semantics<arbitrary>], iteration_bounds = array<i64: 1>, scalar_prefetch = 0 : i64, scratch_operands = 1 : i64, tpu.core_type = #tpu.core_type<tc>, window_params = [{pipeline_mode = #tpu.pipeline_mode<synchronous>, transform_indices = @transform_0, window_bounds = array<i64: 2, 4, 256>}, {pipeline_mode = #tpu.pipeline_mode<synchronous>, transform_indices = @transform_1, window_bounds = array<i64: 2, 8, 256>}, {pipeline_mode = #tpu.pipeline_mode<synchronous>, transform_indices = @transform_2, window_bounds = array<i64: 2, 8, 256>}, {pipeline_mode = #tpu.pipeline_mode<synchronous>, transform_indices = @transform_3, window_bounds = array<i64: 32, 144>}, {pipeline_mode = #tpu.pipeline_mode<synchronous>, transform_indices = @transform_4, window_bounds = array<i64: 32, 1>}, {pipeline_mode = #tpu.pipeline_mode<synchronous>, transform_indices = @transform_5, window_bounds = array<i64: 2, 8, 256>}, {pipeline_mode = #tpu.pipeline_mode<synchronous>, transform_indices = @transform_6, window_bounds = array<i64: 2, 8, 256>}]} {
    %cst = arith.constant 0.000000e+00 : f32
    %0 = vector.broadcast %cst : f32 to vector<2x144x256xf32>
    %c0 = arith.constant 0 : index
    %c0_0 = arith.constant 0 : index
    %c0_1 = arith.constant 0 : index
    %1 = vector.load %arg8[%c0, %c0_0, %c0_1] : memref<2x144x256xf32, #tpu.memory_space<vmem>>, vector<2x144x256xf32>
    tpu.vector_store %arg8[%c0, %c0_0, %c0_1], %0 {strides = array<i32>} : memref<2x144x256xf32, #tpu.memory_space<vmem>>, vector<2x144x256xf32>,
    %2 = tpu.iota {dimensions = array<i32: 2>} : vector<1x1x256xi32>
    %c16_i32 = arith.constant 16 : i32
    %c0_i32 = arith.constant 0 : i32
    %3 = arith.cmpi eq, %c16_i32, %c0_i32 : i32
    %c1_i32 = arith.constant 1 : i32
    %4 = arith.select %3, %c1_i32, %c16_i32 : i32
    %5 = vector.broadcast %4 : i32 to vector<1x1x256xi32>
    %6 = arith.remsi %2, %5 : vector<1x1x256xi32>
    %c0_i32_2 = arith.constant 0 : i32
    %7 = vector.broadcast %c0_i32_2 : i32 to vector<1x1x256xi32>
    %8 = arith.cmpi ne, %6, %7 : vector<1x1x256xi32>
    %c0_i32_3 = arith.constant 0 : i32
    %9 = vector.broadcast %c0_i32_3 : i32 to vector<1x1x256xi32>
    %10 = arith.cmpi slt, %6, %9 : vector<1x1x256xi32>
    %c0_i32_4 = arith.constant 0 : i32
    %11 = arith.cmpi slt, %4, %c0_i32_4 : i32
    %12 = vector.broadcast %11 : i1 to vector<1x1x256xi1>
    %13 = vector.broadcast %12 : vector<1x1x256xi1> to vector<1x1x256xi1>
    %14 = arith.xori %10, %13 : vector<1x1x256xi1>
    %15 = arith.andi %14, %8 : vector<1x1x256xi1>
    %16 = vector.broadcast %4 : i32 to vector<1x1x256xi32>
    %17 = arith.addi %6, %16 : vector<1x1x256xi32>
    %18 = arith.select %15, %17, %6 : vector<1x1x256xi1>, vector<1x1x256xi32>
    %c0_5 = arith.constant 0 : index
    %c0_6 = arith.constant 0 : index
    %c0_7 = arith.constant 0 : index
    %19 = vector.load %arg2[%c0_5, %c0_6, %c0_7] : memref<2x8x256xf32, #tpu.memory_space<vmem>>, vector<2x8x256xf32>
    %c0_8 = arith.constant 0 : index
    %c0_9 = arith.constant 0 : index
    %c0_10 = arith.constant 0 : index
    %20 = vector.load %arg1[%c0_8, %c0_9, %c0_10] : memref<2x4x256xf32, #tpu.memory_space<vmem>>, vector<2x4x256xf32>
    %21 = vector.extract_strided_slice %19 {offsets = [0, 0, 0], sizes = [2, 8, 239], strides = [1, 1, 1]} : vector<2x8x256xf32> to vector<2x8x239xf32>
    %22 = vector.extract_strided_slice %18 {offsets = [0, 0, 0], sizes = [1, 1, 239], strides = [1, 1, 1]} : vector<1x1x256xi32> to vector<1x1x239xi32>
    %c-1_i32 = arith.constant -1 : i32
    %23 = vector.broadcast %c-1_i32 : i32 to vector<1x1x239xi32>
    %24 = arith.subi %22, %23 : vector<1x1x239xi32>
    %c0_i32_11 = arith.constant 0 : i32
    %25 = vector.broadcast %c0_i32_11 : i32 to vector<1x1x239xi32>
    %26 = arith.cmpi sge, %24, %25 : vector<1x1x239xi32>
    %c-1_i32_12 = arith.constant -1 : i32
    %27 = vector.broadcast %c-1_i32_12 : i32 to vector<1x1x239xi32>
    %28 = arith.subi %22, %27 : vector<1x1x239xi32>
    %c16_i32_13 = arith.constant 16 : i32
    %29 = vector.broadcast %c16_i32_13 : i32 to vector<1x1x239xi32>
    %30 = arith.cmpi slt, %28, %29 : vector<1x1x239xi32>
    %31 = arith.andi %26, %30 : vector<1x1x239xi1>
    %cst_14 = arith.constant 0.000000e+00 : f32
    %32 = vector.shape_cast %31 : vector<1x1x239xi1> to vector<1x1x239xi1>
    %33 = vector.broadcast %32 : vector<1x1x239xi1> to vector<2x8x239xi1>
    %34 = vector.broadcast %cst_14 : f32 to vector<2x8x239xf32>
    %35 = arith.select %33, %21, %34 : vector<2x8x239xi1>, vector<2x8x239xf32>
    %c0_15 = arith.constant 0 : index
    %c0_16 = arith.constant 0 : index
    %c17 = arith.constant 17 : index
    %36 = vector.load %arg8[%c0_15, %c0_16, %c17] : memref<2x144x256xf32, #tpu.memory_space<vmem>>, vector<2x8x239xf32>
    tpu.vector_store %arg8[%c0_15, %c0_16, %c17], %35 {strides = array<i32>} : memref<2x144x256xf32, #tpu.memory_space<vmem>>, vector<2x8x239xf32>,
    %37 = vector.extract_strided_slice %20 {offsets = [0, 0, 0], sizes = [2, 4, 239], strides = [1, 1, 1]} : vector<2x4x256xf32> to vector<2x4x239xf32>
    %38 = vector.extract_strided_slice %18 {offsets = [0, 0, 0], sizes = [1, 1, 239], strides = [1, 1, 1]} : vector<1x1x256xi32> to vector<1x1x239xi32>
    %c-1_i32_17 = arith.constant -1 : i32
    %39 = vector.broadcast %c-1_i32_17 : i32 to vector<1x1x239xi32>
    %40 = arith.subi %38, %39 : vector<1x1x239xi32>
    %c0_i32_18 = arith.constant 0 : i32
    %41 = vector.broadcast %c0_i32_18 : i32 to vector<1x1x239xi32>
    %42 = arith.cmpi sge, %40, %41 : vector<1x1x239xi32>
    %c-1_i32_19 = arith.constant -1 : i32
    %43 = vector.broadcast %c-1_i32_19 : i32 to vector<1x1x239xi32>
    %44 = arith.subi %38, %43 : vector<1x1x239xi32>
    %c16_i32_20 = arith.constant 16 : i32
    %45 = vector.broadcast %c16_i32_20 : i32 to vector<1x1x239xi32>
    %46 = arith.cmpi slt, %44, %45 : vector<1x1x239xi32>
    %47 = arith.andi %42, %46 : vector<1x1x239xi1>
    %cst_21 = arith.constant 0.000000e+00 : f32
    %48 = vector.shape_cast %47 : vector<1x1x239xi1> to vector<1x1x239xi1>
    %49 = vector.broadcast %48 : vector<1x1x239xi1> to vector<2x4x239xi1>
    %50 = vector.broadcast %cst_21 : f32 to vector<2x4x239xf32>
    %51 = arith.select %49, %37, %50 : vector<2x4x239xi1>, vector<2x4x239xf32>
    %c0_22 = arith.constant 0 : index
    %c8 = arith.constant 8 : index
    %c17_23 = arith.constant 17 : index
    %52 = vector.load %arg8[%c0_22, %c8, %c17_23] : memref<2x144x256xf32, #tpu.memory_space<vmem>>, vector<2x4x239xf32>
    tpu.vector_store %arg8[%c0_22, %c8, %c17_23], %51 {strides = array<i32>} : memref<2x144x256xf32, #tpu.memory_space<vmem>>, vector<2x4x239xf32>,
    %53 = vector.extract_strided_slice %19 {offsets = [0, 0, 0], sizes = [2, 8, 240], strides = [1, 1, 1]} : vector<2x8x256xf32> to vector<2x8x240xf32>
    %c0_24 = arith.constant 0 : index
    %c16 = arith.constant 16 : index
    %c16_25 = arith.constant 16 : index
    %54 = vector.load %arg8[%c0_24, %c16, %c16_25] : memref<2x144x256xf32, #tpu.memory_space<vmem>>, vector<2x8x240xf32>
    tpu.vector_store %arg8[%c0_24, %c16, %c16_25], %53 {strides = array<i32>} : memref<2x144x256xf32, #tpu.memory_space<vmem>>, vector<2x8x240xf32>,
    %55 = vector.extract_strided_slice %20 {offsets = [0, 0, 0], sizes = [2, 4, 240], strides = [1, 1, 1]} : vector<2x4x256xf32> to vector<2x4x240xf32>
    %c0_26 = arith.constant 0 : index
    %c24 = arith.constant 24 : index
    %c16_27 = arith.constant 16 : index
    %56 = vector.load %arg8[%c0_26, %c24, %c16_27] : memref<2x144x256xf32, #tpu.memory_space<vmem>>, vector<2x4x240xf32>
    tpu.vector_store %arg8[%c0_26, %c24, %c16_27], %55 {strides = array<i32>} : memref<2x144x256xf32, #tpu.memory_space<vmem>>, vector<2x4x240xf32>,
    %57 = vector.extract_strided_slice %19 {offsets = [0, 0, 0], sizes = [2, 8, 241], strides = [1, 1, 1]} : vector<2x8x256xf32> to vector<2x8x241xf32>
    %58 = vector.extract_strided_slice %18 {offsets = [0, 0, 0], sizes = [1, 1, 241], strides = [1, 1, 1]} : vector<1x1x256xi32> to vector<1x1x241xi32>
    %c1_i32_28 = arith.constant 1 : i32
    %59 = vector.broadcast %c1_i32_28 : i32 to vector<1x1x241xi32>
    %60 = arith.subi %58, %59 : vector<1x1x241xi32>
    %c0_i32_29 = arith.constant 0 : i32
    %61 = vector.broadcast %c0_i32_29 : i32 to vector<1x1x241xi32>
    %62 = arith.cmpi sge, %60, %61 : vector<1x1x241xi32>
    %c1_i32_30 = arith.constant 1 : i32
    %63 = vector.broadcast %c1_i32_30 : i32 to vector<1x1x241xi32>
    %64 = arith.subi %58, %63 : vector<1x1x241xi32>
    %c16_i32_31 = arith.constant 16 : i32
    %65 = vector.broadcast %c16_i32_31 : i32 to vector<1x1x241xi32>
    %66 = arith.cmpi slt, %64, %65 : vector<1x1x241xi32>
    %67 = arith.andi %62, %66 : vector<1x1x241xi1>
    %cst_32 = arith.constant 0.000000e+00 : f32
    %68 = vector.shape_cast %67 : vector<1x1x241xi1> to vector<1x1x241xi1>
    %69 = vector.broadcast %68 : vector<1x1x241xi1> to vector<2x8x241xi1>
    %70 = vector.broadcast %cst_32 : f32 to vector<2x8x241xf32>
    %71 = arith.select %69, %57, %70 : vector<2x8x241xi1>, vector<2x8x241xf32>
    %c0_33 = arith.constant 0 : index
    %c32 = arith.constant 32 : index
    %c15 = arith.constant 15 : index
    %72 = vector.load %arg8[%c0_33, %c32, %c15] : memref<2x144x256xf32, #tpu.memory_space<vmem>>, vector<2x8x241xf32>
    tpu.vector_store %arg8[%c0_33, %c32, %c15], %71 {strides = array<i32>} : memref<2x144x256xf32, #tpu.memory_space<vmem>>, vector<2x8x241xf32>,
    %73 = vector.extract_strided_slice %20 {offsets = [0, 0, 0], sizes = [2, 4, 241], strides = [1, 1, 1]} : vector<2x4x256xf32> to vector<2x4x241xf32>
    %74 = vector.extract_strided_slice %18 {offsets = [0, 0, 0], sizes = [1, 1, 241], strides = [1, 1, 1]} : vector<1x1x256xi32> to vector<1x1x241xi32>
    %c1_i32_34 = arith.constant 1 : i32
    %75 = vector.broadcast %c1_i32_34 : i32 to vector<1x1x241xi32>
    %76 = arith.subi %74, %75 : vector<1x1x241xi32>
    %c0_i32_35 = arith.constant 0 : i32
    %77 = vector.broadcast %c0_i32_35 : i32 to vector<1x1x241xi32>
    %78 = arith.cmpi sge, %76, %77 : vector<1x1x241xi32>
    %c1_i32_36 = arith.constant 1 : i32
    %79 = vector.broadcast %c1_i32_36 : i32 to vector<1x1x241xi32>
    %80 = arith.subi %74, %79 : vector<1x1x241xi32>
    %c16_i32_37 = arith.constant 16 : i32
    %81 = vector.broadcast %c16_i32_37 : i32 to vector<1x1x241xi32>
    %82 = arith.cmpi slt, %80, %81 : vector<1x1x241xi32>
    %83 = arith.andi %78, %82 : vector<1x1x241xi1>
    %cst_38 = arith.constant 0.000000e+00 : f32
    %84 = vector.shape_cast %83 : vector<1x1x241xi1> to vector<1x1x241xi1>
    %85 = vector.broadcast %84 : vector<1x1x241xi1> to vector<2x4x241xi1>
    %86 = vector.broadcast %cst_38 : f32 to vector<2x4x241xf32>
    %87 = arith.select %85, %73, %86 : vector<2x4x241xi1>, vector<2x4x241xf32>
    %c0_39 = arith.constant 0 : index
    %c40 = arith.constant 40 : index
    %c15_40 = arith.constant 15 : index
    %88 = vector.load %arg8[%c0_39, %c40, %c15_40] : memref<2x144x256xf32, #tpu.memory_space<vmem>>, vector<2x4x241xf32>
    tpu.vector_store %arg8[%c0_39, %c40, %c15_40], %87 {strides = array<i32>} : memref<2x144x256xf32, #tpu.memory_space<vmem>>, vector<2x4x241xf32>,
    %89 = vector.extract_strided_slice %19 {offsets = [0, 0, 0], sizes = [2, 8, 255], strides = [1, 1, 1]} : vector<2x8x256xf32> to vector<2x8x255xf32>
    %90 = vector.extract_strided_slice %18 {offsets = [0, 0, 0], sizes = [1, 1, 255], strides = [1, 1, 1]} : vector<1x1x256xi32> to vector<1x1x255xi32>
    %c-1_i32_41 = arith.constant -1 : i32
    %91 = vector.broadcast %c-1_i32_41 : i32 to vector<1x1x255xi32>
    %92 = arith.subi %90, %91 : vector<1x1x255xi32>
    %c0_i32_42 = arith.constant 0 : i32
    %93 = vector.broadcast %c0_i32_42 : i32 to vector<1x1x255xi32>
    %94 = arith.cmpi sge, %92, %93 : vector<1x1x255xi32>
    %c-1_i32_43 = arith.constant -1 : i32
    %95 = vector.broadcast %c-1_i32_43 : i32 to vector<1x1x255xi32>
    %96 = arith.subi %90, %95 : vector<1x1x255xi32>
    %c16_i32_44 = arith.constant 16 : i32
    %97 = vector.broadcast %c16_i32_44 : i32 to vector<1x1x255xi32>
    %98 = arith.cmpi slt, %96, %97 : vector<1x1x255xi32>
    %99 = arith.andi %94, %98 : vector<1x1x255xi1>
    %cst_45 = arith.constant 0.000000e+00 : f32
    %100 = vector.shape_cast %99 : vector<1x1x255xi1> to vector<1x1x255xi1>
    %101 = vector.broadcast %100 : vector<1x1x255xi1> to vector<2x8x255xi1>
    %102 = vector.broadcast %cst_45 : f32 to vector<2x8x255xf32>
    %103 = arith.select %101, %89, %102 : vector<2x8x255xi1>, vector<2x8x255xf32>
    %c0_46 = arith.constant 0 : index
    %c48 = arith.constant 48 : index
    %c1 = arith.constant 1 : index
    %104 = vector.load %arg8[%c0_46, %c48, %c1] : memref<2x144x256xf32, #tpu.memory_space<vmem>>, vector<2x8x255xf32>
    tpu.vector_store %arg8[%c0_46, %c48, %c1], %103 {strides = array<i32>} : memref<2x144x256xf32, #tpu.memory_space<vmem>>, vector<2x8x255xf32>,
    %105 = vector.extract_strided_slice %20 {offsets = [0, 0, 0], sizes = [2, 4, 255], strides = [1, 1, 1]} : vector<2x4x256xf32> to vector<2x4x255xf32>
    %106 = vector.extract_strided_slice %18 {offsets = [0, 0, 0], sizes = [1, 1, 255], strides = [1, 1, 1]} : vector<1x1x256xi32> to vector<1x1x255xi32>
    %c-1_i32_47 = arith.constant -1 : i32
    %107 = vector.broadcast %c-1_i32_47 : i32 to vector<1x1x255xi32>
    %108 = arith.subi %106, %107 : vector<1x1x255xi32>
    %c0_i32_48 = arith.constant 0 : i32
    %109 = vector.broadcast %c0_i32_48 : i32 to vector<1x1x255xi32>
    %110 = arith.cmpi sge, %108, %109 : vector<1x1x255xi32>
    %c-1_i32_49 = arith.constant -1 : i32
    %111 = vector.broadcast %c-1_i32_49 : i32 to vector<1x1x255xi32>
    %112 = arith.subi %106, %111 : vector<1x1x255xi32>
    %c16_i32_50 = arith.constant 16 : i32
    %113 = vector.broadcast %c16_i32_50 : i32 to vector<1x1x255xi32>
    %114 = arith.cmpi slt, %112, %113 : vector<1x1x255xi32>
    %115 = arith.andi %110, %114 : vector<1x1x255xi1>
    %cst_51 = arith.constant 0.000000e+00 : f32
    %116 = vector.shape_cast %115 : vector<1x1x255xi1> to vector<1x1x255xi1>
    %117 = vector.broadcast %116 : vector<1x1x255xi1> to vector<2x4x255xi1>
    %118 = vector.broadcast %cst_51 : f32 to vector<2x4x255xf32>
    %119 = arith.select %117, %105, %118 : vector<2x4x255xi1>, vector<2x4x255xf32>
    %c0_52 = arith.constant 0 : index
    %c56 = arith.constant 56 : index
    %c1_53 = arith.constant 1 : index
    %120 = vector.load %arg8[%c0_52, %c56, %c1_53] : memref<2x144x256xf32, #tpu.memory_space<vmem>>, vector<2x4x255xf32>
    tpu.vector_store %arg8[%c0_52, %c56, %c1_53], %119 {strides = array<i32>} : memref<2x144x256xf32, #tpu.memory_space<vmem>>, vector<2x4x255xf32>,
    %c0_54 = arith.constant 0 : index
    %c64 = arith.constant 64 : index
    %c0_55 = arith.constant 0 : index
    %121 = vector.load %arg8[%c0_54, %c64, %c0_55] : memref<2x144x256xf32, #tpu.memory_space<vmem>>, vector<2x8x256xf32>
    tpu.vector_store %arg8[%c0_54, %c64, %c0_55], %19 {strides = array<i32>} : memref<2x144x256xf32, #tpu.memory_space<vmem>>, vector<2x8x256xf32>,
    %c0_56 = arith.constant 0 : index
    %c72 = arith.constant 72 : index
    %c0_57 = arith.constant 0 : index
    %122 = vector.load %arg8[%c0_56, %c72, %c0_57] : memref<2x144x256xf32, #tpu.memory_space<vmem>>, vector<2x4x256xf32>
    tpu.vector_store %arg8[%c0_56, %c72, %c0_57], %20 {strides = array<i32>} : memref<2x144x256xf32, #tpu.memory_space<vmem>>, vector<2x4x256xf32>,
    %123 = vector.extract_strided_slice %19 {offsets = [0, 0, 1], sizes = [2, 8, 255], strides = [1, 1, 1]} : vector<2x8x256xf32> to vector<2x8x255xf32>
    %124 = vector.extract_strided_slice %18 {offsets = [0, 0, 1], sizes = [1, 1, 255], strides = [1, 1, 1]} : vector<1x1x256xi32> to vector<1x1x255xi32>
    %c1_i32_58 = arith.constant 1 : i32
    %125 = vector.broadcast %c1_i32_58 : i32 to vector<1x1x255xi32>
    %126 = arith.subi %124, %125 : vector<1x1x255xi32>
    %c0_i32_59 = arith.constant 0 : i32
    %127 = vector.broadcast %c0_i32_59 : i32 to vector<1x1x255xi32>
    %128 = arith.cmpi sge, %126, %127 : vector<1x1x255xi32>
    %c1_i32_60 = arith.constant 1 : i32
    %129 = vector.broadcast %c1_i32_60 : i32 to vector<1x1x255xi32>
    %130 = arith.subi %124, %129 : vector<1x1x255xi32>
    %c16_i32_61 = arith.constant 16 : i32
    %131 = vector.broadcast %c16_i32_61 : i32 to vector<1x1x255xi32>
    %132 = arith.cmpi slt, %130, %131 : vector<1x1x255xi32>
    %133 = arith.andi %128, %132 : vector<1x1x255xi1>
    %cst_62 = arith.constant 0.000000e+00 : f32
    %134 = vector.shape_cast %133 : vector<1x1x255xi1> to vector<1x1x255xi1>
    %135 = vector.broadcast %134 : vector<1x1x255xi1> to vector<2x8x255xi1>
    %136 = vector.broadcast %cst_62 : f32 to vector<2x8x255xf32>
    %137 = arith.select %135, %123, %136 : vector<2x8x255xi1>, vector<2x8x255xf32>
    %c0_63 = arith.constant 0 : index
    %c80 = arith.constant 80 : index
    %c0_64 = arith.constant 0 : index
    %138 = vector.load %arg8[%c0_63, %c80, %c0_64] : memref<2x144x256xf32, #tpu.memory_space<vmem>>, vector<2x8x255xf32>
    tpu.vector_store %arg8[%c0_63, %c80, %c0_64], %137 {strides = array<i32>} : memref<2x144x256xf32, #tpu.memory_space<vmem>>, vector<2x8x255xf32>,
    %139 = vector.extract_strided_slice %20 {offsets = [0, 0, 1], sizes = [2, 4, 255], strides = [1, 1, 1]} : vector<2x4x256xf32> to vector<2x4x255xf32>
    %140 = vector.extract_strided_slice %18 {offsets = [0, 0, 1], sizes = [1, 1, 255], strides = [1, 1, 1]} : vector<1x1x256xi32> to vector<1x1x255xi32>
    %c1_i32_65 = arith.constant 1 : i32
    %141 = vector.broadcast %c1_i32_65 : i32 to vector<1x1x255xi32>
    %142 = arith.subi %140, %141 : vector<1x1x255xi32>
    %c0_i32_66 = arith.constant 0 : i32
    %143 = vector.broadcast %c0_i32_66 : i32 to vector<1x1x255xi32>
    %144 = arith.cmpi sge, %142, %143 : vector<1x1x255xi32>
    %c1_i32_67 = arith.constant 1 : i32
    %145 = vector.broadcast %c1_i32_67 : i32 to vector<1x1x255xi32>
    %146 = arith.subi %140, %145 : vector<1x1x255xi32>
    %c16_i32_68 = arith.constant 16 : i32
    %147 = vector.broadcast %c16_i32_68 : i32 to vector<1x1x255xi32>
    %148 = arith.cmpi slt, %146, %147 : vector<1x1x255xi32>
    %149 = arith.andi %144, %148 : vector<1x1x255xi1>
    %cst_69 = arith.constant 0.000000e+00 : f32
    %150 = vector.shape_cast %149 : vector<1x1x255xi1> to vector<1x1x255xi1>
    %151 = vector.broadcast %150 : vector<1x1x255xi1> to vector<2x4x255xi1>
    %152 = vector.broadcast %cst_69 : f32 to vector<2x4x255xf32>
    %153 = arith.select %151, %139, %152 : vector<2x4x255xi1>, vector<2x4x255xf32>
    %c0_70 = arith.constant 0 : index
    %c88 = arith.constant 88 : index
    %c0_71 = arith.constant 0 : index
    %154 = vector.load %arg8[%c0_70, %c88, %c0_71] : memref<2x144x256xf32, #tpu.memory_space<vmem>>, vector<2x4x255xf32>
    tpu.vector_store %arg8[%c0_70, %c88, %c0_71], %153 {strides = array<i32>} : memref<2x144x256xf32, #tpu.memory_space<vmem>>, vector<2x4x255xf32>,
    %155 = vector.extract_strided_slice %19 {offsets = [0, 0, 15], sizes = [2, 8, 241], strides = [1, 1, 1]} : vector<2x8x256xf32> to vector<2x8x241xf32>
    %156 = vector.extract_strided_slice %18 {offsets = [0, 0, 15], sizes = [1, 1, 241], strides = [1, 1, 1]} : vector<1x1x256xi32> to vector<1x1x241xi32>
    %c-1_i32_72 = arith.constant -1 : i32
    %157 = vector.broadcast %c-1_i32_72 : i32 to vector<1x1x241xi32>
    %158 = arith.subi %156, %157 : vector<1x1x241xi32>
    %c0_i32_73 = arith.constant 0 : i32
    %159 = vector.broadcast %c0_i32_73 : i32 to vector<1x1x241xi32>
    %160 = arith.cmpi sge, %158, %159 : vector<1x1x241xi32>
    %c-1_i32_74 = arith.constant -1 : i32
    %161 = vector.broadcast %c-1_i32_74 : i32 to vector<1x1x241xi32>
    %162 = arith.subi %156, %161 : vector<1x1x241xi32>
    %c16_i32_75 = arith.constant 16 : i32
    %163 = vector.broadcast %c16_i32_75 : i32 to vector<1x1x241xi32>
    %164 = arith.cmpi slt, %162, %163 : vector<1x1x241xi32>
    %165 = arith.andi %160, %164 : vector<1x1x241xi1>
    %cst_76 = arith.constant 0.000000e+00 : f32
    %166 = vector.shape_cast %165 : vector<1x1x241xi1> to vector<1x1x241xi1>
    %167 = vector.broadcast %166 : vector<1x1x241xi1> to vector<2x8x241xi1>
    %168 = vector.broadcast %cst_76 : f32 to vector<2x8x241xf32>
    %169 = arith.select %167, %155, %168 : vector<2x8x241xi1>, vector<2x8x241xf32>
    %c0_77 = arith.constant 0 : index
    %c96 = arith.constant 96 : index
    %c0_78 = arith.constant 0 : index
    %170 = vector.load %arg8[%c0_77, %c96, %c0_78] : memref<2x144x256xf32, #tpu.memory_space<vmem>>, vector<2x8x241xf32>
    tpu.vector_store %arg8[%c0_77, %c96, %c0_78], %169 {strides = array<i32>} : memref<2x144x256xf32, #tpu.memory_space<vmem>>, vector<2x8x241xf32>,
    %171 = vector.extract_strided_slice %20 {offsets = [0, 0, 15], sizes = [2, 4, 241], strides = [1, 1, 1]} : vector<2x4x256xf32> to vector<2x4x241xf32>
    %172 = vector.extract_strided_slice %18 {offsets = [0, 0, 15], sizes = [1, 1, 241], strides = [1, 1, 1]} : vector<1x1x256xi32> to vector<1x1x241xi32>
    %c-1_i32_79 = arith.constant -1 : i32
    %173 = vector.broadcast %c-1_i32_79 : i32 to vector<1x1x241xi32>
    %174 = arith.subi %172, %173 : vector<1x1x241xi32>
    %c0_i32_80 = arith.constant 0 : i32
    %175 = vector.broadcast %c0_i32_80 : i32 to vector<1x1x241xi32>
    %176 = arith.cmpi sge, %174, %175 : vector<1x1x241xi32>
    %c-1_i32_81 = arith.constant -1 : i32
    %177 = vector.broadcast %c-1_i32_81 : i32 to vector<1x1x241xi32>
    %178 = arith.subi %172, %177 : vector<1x1x241xi32>
    %c16_i32_82 = arith.constant 16 : i32
    %179 = vector.broadcast %c16_i32_82 : i32 to vector<1x1x241xi32>
    %180 = arith.cmpi slt, %178, %179 : vector<1x1x241xi32>
    %181 = arith.andi %176, %180 : vector<1x1x241xi1>
    %cst_83 = arith.constant 0.000000e+00 : f32
    %182 = vector.shape_cast %181 : vector<1x1x241xi1> to vector<1x1x241xi1>
    %183 = vector.broadcast %182 : vector<1x1x241xi1> to vector<2x4x241xi1>
    %184 = vector.broadcast %cst_83 : f32 to vector<2x4x241xf32>
    %185 = arith.select %183, %171, %184 : vector<2x4x241xi1>, vector<2x4x241xf32>
    %c0_84 = arith.constant 0 : index
    %c104 = arith.constant 104 : index
    %c0_85 = arith.constant 0 : index
    %186 = vector.load %arg8[%c0_84, %c104, %c0_85] : memref<2x144x256xf32, #tpu.memory_space<vmem>>, vector<2x4x241xf32>
    tpu.vector_store %arg8[%c0_84, %c104, %c0_85], %185 {strides = array<i32>} : memref<2x144x256xf32, #tpu.memory_space<vmem>>, vector<2x4x241xf32>,
    %187 = vector.extract_strided_slice %19 {offsets = [0, 0, 16], sizes = [2, 8, 240], strides = [1, 1, 1]} : vector<2x8x256xf32> to vector<2x8x240xf32>
    %c0_86 = arith.constant 0 : index
    %c112 = arith.constant 112 : index
    %c0_87 = arith.constant 0 : index
    %188 = vector.load %arg8[%c0_86, %c112, %c0_87] : memref<2x144x256xf32, #tpu.memory_space<vmem>>, vector<2x8x240xf32>
    tpu.vector_store %arg8[%c0_86, %c112, %c0_87], %187 {strides = array<i32>} : memref<2x144x256xf32, #tpu.memory_space<vmem>>, vector<2x8x240xf32>,
    %189 = vector.extract_strided_slice %20 {offsets = [0, 0, 16], sizes = [2, 4, 240], strides = [1, 1, 1]} : vector<2x4x256xf32> to vector<2x4x240xf32>
    %c0_88 = arith.constant 0 : index
    %c120 = arith.constant 120 : index
    %c0_89 = arith.constant 0 : index
    %190 = vector.load %arg8[%c0_88, %c120, %c0_89] : memref<2x144x256xf32, #tpu.memory_space<vmem>>, vector<2x4x240xf32>
    tpu.vector_store %arg8[%c0_88, %c120, %c0_89], %189 {strides = array<i32>} : memref<2x144x256xf32, #tpu.memory_space<vmem>>, vector<2x4x240xf32>,
    %191 = vector.extract_strided_slice %19 {offsets = [0, 0, 17], sizes = [2, 8, 239], strides = [1, 1, 1]} : vector<2x8x256xf32> to vector<2x8x239xf32>
    %192 = vector.extract_strided_slice %18 {offsets = [0, 0, 17], sizes = [1, 1, 239], strides = [1, 1, 1]} : vector<1x1x256xi32> to vector<1x1x239xi32>
    %c1_i32_90 = arith.constant 1 : i32
    %193 = vector.broadcast %c1_i32_90 : i32 to vector<1x1x239xi32>
    %194 = arith.subi %192, %193 : vector<1x1x239xi32>
    %c0_i32_91 = arith.constant 0 : i32
    %195 = vector.broadcast %c0_i32_91 : i32 to vector<1x1x239xi32>
    %196 = arith.cmpi sge, %194, %195 : vector<1x1x239xi32>
    %c1_i32_92 = arith.constant 1 : i32
    %197 = vector.broadcast %c1_i32_92 : i32 to vector<1x1x239xi32>
    %198 = arith.subi %192, %197 : vector<1x1x239xi32>
    %c16_i32_93 = arith.constant 16 : i32
    %199 = vector.broadcast %c16_i32_93 : i32 to vector<1x1x239xi32>
    %200 = arith.cmpi slt, %198, %199 : vector<1x1x239xi32>
    %201 = arith.andi %196, %200 : vector<1x1x239xi1>
    %cst_94 = arith.constant 0.000000e+00 : f32
    %202 = vector.shape_cast %201 : vector<1x1x239xi1> to vector<1x1x239xi1>
    %203 = vector.broadcast %202 : vector<1x1x239xi1> to vector<2x8x239xi1>
    %204 = vector.broadcast %cst_94 : f32 to vector<2x8x239xf32>
    %205 = arith.select %203, %191, %204 : vector<2x8x239xi1>, vector<2x8x239xf32>
    %c0_95 = arith.constant 0 : index
    %c128 = arith.constant 128 : index
    %c0_96 = arith.constant 0 : index
    %206 = vector.load %arg8[%c0_95, %c128, %c0_96] : memref<2x144x256xf32, #tpu.memory_space<vmem>>, vector<2x8x239xf32>
    tpu.vector_store %arg8[%c0_95, %c128, %c0_96], %205 {strides = array<i32>} : memref<2x144x256xf32, #tpu.memory_space<vmem>>, vector<2x8x239xf32>,
    %207 = vector.extract_strided_slice %20 {offsets = [0, 0, 17], sizes = [2, 4, 239], strides = [1, 1, 1]} : vector<2x4x256xf32> to vector<2x4x239xf32>
    %208 = vector.extract_strided_slice %18 {offsets = [0, 0, 17], sizes = [1, 1, 239], strides = [1, 1, 1]} : vector<1x1x256xi32> to vector<1x1x239xi32>
    %c1_i32_97 = arith.constant 1 : i32
    %209 = vector.broadcast %c1_i32_97 : i32 to vector<1x1x239xi32>
    %210 = arith.subi %208, %209 : vector<1x1x239xi32>
    %c0_i32_98 = arith.constant 0 : i32
    %211 = vector.broadcast %c0_i32_98 : i32 to vector<1x1x239xi32>
    %212 = arith.cmpi sge, %210, %211 : vector<1x1x239xi32>
    %c1_i32_99 = arith.constant 1 : i32
    %213 = vector.broadcast %c1_i32_99 : i32 to vector<1x1x239xi32>
    %214 = arith.subi %208, %213 : vector<1x1x239xi32>
    %c16_i32_100 = arith.constant 16 : i32
    %215 = vector.broadcast %c16_i32_100 : i32 to vector<1x1x239xi32>
    %216 = arith.cmpi slt, %214, %215 : vector<1x1x239xi32>
    %217 = arith.andi %212, %216 : vector<1x1x239xi1>
    %cst_101 = arith.constant 0.000000e+00 : f32
    %218 = vector.shape_cast %217 : vector<1x1x239xi1> to vector<1x1x239xi1>
    %219 = vector.broadcast %218 : vector<1x1x239xi1> to vector<2x4x239xi1>
    %220 = vector.broadcast %cst_101 : f32 to vector<2x4x239xf32>
    %221 = arith.select %219, %207, %220 : vector<2x4x239xi1>, vector<2x4x239xf32>
    %c0_102 = arith.constant 0 : index
    %c136 = arith.constant 136 : index
    %c0_103 = arith.constant 0 : index
    %222 = vector.load %arg8[%c0_102, %c136, %c0_103] : memref<2x144x256xf32, #tpu.memory_space<vmem>>, vector<2x4x239xf32>
    tpu.vector_store %arg8[%c0_102, %c136, %c0_103], %221 {strides = array<i32>} : memref<2x144x256xf32, #tpu.memory_space<vmem>>, vector<2x4x239xf32>,
    %c0_104 = arith.constant 0 : index
    %c0_105 = arith.constant 0 : index
    %223 = vector.load %arg4[%c0_104, %c0_105] : memref<32x144xf32, #tpu.memory_space<vmem>>, vector<32x144xf32>
    %c0_106 = arith.constant 0 : index
    %c0_107 = arith.constant 0 : index
    %224 = vector.load %arg5[%c0_106, %c0_107] : memref<32x1xf32, #tpu.memory_space<vmem>>, vector<32x1xf32>
    %225 = vector.shape_cast %224 : vector<32x1xf32> to vector<32x1xf32>
    %226 = vector.broadcast %225 : vector<32x1xf32> to vector<32x256xf32>
    %c0_108 = arith.constant 0 : index
    %c0_109 = arith.constant 0 : index
    %c0_110 = arith.constant 0 : index
    %227 = vector.load %arg8[%c0_108, %c0_109, %c0_110] : memref<2x144x256xf32, #tpu.memory_space<vmem>>, vector<1x144x256xf32>
    %228 = vector.shape_cast %227 : vector<1x144x256xf32> to vector<144x256xf32>
    %cst_111 = arith.constant dense<0.000000e+00> : vector<32x256xf32>
    %229 = tpu.matmul %223, %228, %cst_111 {dimension_numbers = #tpu.dot_dimension_numbers<[1], [0], [0], [1], [0, 0, 1, 1], [], []>} : vector<32x144xf32>, vector<144x256xf32>, vector<32x256xf32> -> vector<32x256xf32>
    %230 = arith.addf %229, %226 : vector<32x256xf32>
    %231 = vector.extract_strided_slice %230 {offsets = [0, 0], sizes = [8, 256], strides = [1, 1]} : vector<32x256xf32> to vector<8x256xf32>
    %232 = arith.negf %231 : vector<8x256xf32>
    %233 = math.exp %232 : vector<8x256xf32>
    %cst_112 = arith.constant 1.000000e+00 : f32
    %234 = vector.broadcast %cst_112 : f32 to vector<8x256xf32>
    %235 = arith.addf %234, %233 : vector<8x256xf32>
    %236 = arith.divf %234, %235 : vector<8x256xf32>
    %237 = vector.extract_strided_slice %230 {offsets = [8, 0], sizes = [8, 256], strides = [1, 1]} : vector<32x256xf32> to vector<8x256xf32>
    %238 = arith.negf %237 : vector<8x256xf32>
    %239 = math.exp %238 : vector<8x256xf32>
    %cst_113 = arith.constant 1.000000e+00 : f32
    %240 = vector.broadcast %cst_113 : f32 to vector<8x256xf32>
    %241 = arith.addf %240, %239 : vector<8x256xf32>
    %242 = arith.divf %240, %241 : vector<8x256xf32>
    %243 = vector.extract_strided_slice %230 {offsets = [16, 0], sizes = [8, 256], strides = [1, 1]} : vector<32x256xf32> to vector<8x256xf32>
    %244 = arith.negf %243 : vector<8x256xf32>
    %245 = math.exp %244 : vector<8x256xf32>
    %cst_114 = arith.constant 1.000000e+00 : f32
    %246 = vector.broadcast %cst_114 : f32 to vector<8x256xf32>
    %247 = arith.addf %246, %245 : vector<8x256xf32>
    %248 = arith.divf %246, %247 : vector<8x256xf32>
    %249 = vector.extract_strided_slice %230 {offsets = [24, 0], sizes = [8, 256], strides = [1, 1]} : vector<32x256xf32> to vector<8x256xf32>
    %250 = math.tanh %249 : vector<8x256xf32>
    %c0_115 = arith.constant 0 : index
    %c0_116 = arith.constant 0 : index
    %c0_117 = arith.constant 0 : index
    %251 = vector.load %arg3[%c0_115, %c0_116, %c0_117] : memref<2x8x256xf32, #tpu.memory_space<vmem>>, vector<1x8x256xf32>
    %252 = vector.shape_cast %251 : vector<1x8x256xf32> to vector<8x256xf32>
    %253 = arith.mulf %242, %252 : vector<8x256xf32>
    %254 = arith.mulf %236, %250 : vector<8x256xf32>
    %255 = arith.addf %253, %254 : vector<8x256xf32>
    %256 = math.tanh %255 : vector<8x256xf32>
    %257 = arith.mulf %248, %256 : vector<8x256xf32>
    %c0_118 = arith.constant 0 : index
    %c0_119 = arith.constant 0 : index
    %c0_120 = arith.constant 0 : index
    %258 = vector.load %arg6[%c0_118, %c0_119, %c0_120] : memref<2x8x256xf32, #tpu.memory_space<vmem>>, vector<1x8x256xf32>
    %259 = vector.shape_cast %258 : vector<1x8x256xf32> to vector<8x256xf32>
    %260 = vector.shape_cast %257 : vector<8x256xf32> to vector<1x8x256xf32>
    tpu.vector_store %arg6[%c0_118, %c0_119, %c0_120], %260 {strides = array<i32>} : memref<2x8x256xf32, #tpu.memory_space<vmem>>, vector<1x8x256xf32>,
    %c0_121 = arith.constant 0 : index
    %c0_122 = arith.constant 0 : index
    %c0_123 = arith.constant 0 : index
    %261 = vector.load %arg7[%c0_121, %c0_122, %c0_123] : memref<2x8x256xf32, #tpu.memory_space<vmem>>, vector<1x8x256xf32>
    %262 = vector.shape_cast %261 : vector<1x8x256xf32> to vector<8x256xf32>
    %263 = vector.shape_cast %255 : vector<8x256xf32> to vector<1x8x256xf32>
    tpu.vector_store %arg7[%c0_121, %c0_122, %c0_123], %263 {strides = array<i32>} : memref<2x8x256xf32, #tpu.memory_space<vmem>>, vector<1x8x256xf32>,
    %c1_124 = arith.constant 1 : index
    %c0_125 = arith.constant 0 : index
    %c0_126 = arith.constant 0 : index
    %264 = vector.load %arg8[%c1_124, %c0_125, %c0_126] : memref<2x144x256xf32, #tpu.memory_space<vmem>>, vector<1x144x256xf32>
    %265 = vector.shape_cast %264 : vector<1x144x256xf32> to vector<144x256xf32>
    %cst_127 = arith.constant dense<0.000000e+00> : vector<32x256xf32>
    %266 = tpu.matmul %223, %265, %cst_127 {dimension_numbers = #tpu.dot_dimension_numbers<[1], [0], [0], [1], [0, 0, 1, 1], [], []>} : vector<32x144xf32>, vector<144x256xf32>, vector<32x256xf32> -> vector<32x256xf32>
    %267 = arith.addf %266, %226 : vector<32x256xf32>
    %268 = vector.extract_strided_slice %267 {offsets = [0, 0], sizes = [8, 256], strides = [1, 1]} : vector<32x256xf32> to vector<8x256xf32>
    %269 = arith.negf %268 : vector<8x256xf32>
    %270 = math.exp %269 : vector<8x256xf32>
    %cst_128 = arith.constant 1.000000e+00 : f32
    %271 = vector.broadcast %cst_128 : f32 to vector<8x256xf32>
    %272 = arith.addf %271, %270 : vector<8x256xf32>
    %273 = arith.divf %271, %272 : vector<8x256xf32>
    %274 = vector.extract_strided_slice %267 {offsets = [8, 0], sizes = [8, 256], strides = [1, 1]} : vector<32x256xf32> to vector<8x256xf32>
    %275 = arith.negf %274 : vector<8x256xf32>
    %276 = math.exp %275 : vector<8x256xf32>
    %cst_129 = arith.constant 1.000000e+00 : f32
    %277 = vector.broadcast %cst_129 : f32 to vector<8x256xf32>
    %278 = arith.addf %277, %276 : vector<8x256xf32>
    %279 = arith.divf %277, %278 : vector<8x256xf32>
    %280 = vector.extract_strided_slice %267 {offsets = [16, 0], sizes = [8, 256], strides = [1, 1]} : vector<32x256xf32> to vector<8x256xf32>
    %281 = arith.negf %280 : vector<8x256xf32>
    %282 = math.exp %281 : vector<8x256xf32>
    %cst_130 = arith.constant 1.000000e+00 : f32
    %283 = vector.broadcast %cst_130 : f32 to vector<8x256xf32>
    %284 = arith.addf %283, %282 : vector<8x256xf32>
    %285 = arith.divf %283, %284 : vector<8x256xf32>
    %286 = vector.extract_strided_slice %267 {offsets = [24, 0], sizes = [8, 256], strides = [1, 1]} : vector<32x256xf32> to vector<8x256xf32>
    %287 = math.tanh %286 : vector<8x256xf32>
    %c1_131 = arith.constant 1 : index
    %c0_132 = arith.constant 0 : index
    %c0_133 = arith.constant 0 : index
    %288 = vector.load %arg3[%c1_131, %c0_132, %c0_133] : memref<2x8x256xf32, #tpu.memory_space<vmem>>, vector<1x8x256xf32>
    %289 = vector.shape_cast %288 : vector<1x8x256xf32> to vector<8x256xf32>
    %290 = arith.mulf %279, %289 : vector<8x256xf32>
    %291 = arith.mulf %273, %287 : vector<8x256xf32>
    %292 = arith.addf %290, %291 : vector<8x256xf32>
    %293 = math.tanh %292 : vector<8x256xf32>
    %294 = arith.mulf %285, %293 : vector<8x256xf32>
    %c1_134 = arith.constant 1 : index
    %c0_135 = arith.constant 0 : index
    %c0_136 = arith.constant 0 : index
    %295 = vector.load %arg6[%c1_134, %c0_135, %c0_136] : memref<2x8x256xf32, #tpu.memory_space<vmem>>, vector<1x8x256xf32>
    %296 = vector.shape_cast %295 : vector<1x8x256xf32> to vector<8x256xf32>
    %297 = vector.shape_cast %294 : vector<8x256xf32> to vector<1x8x256xf32>
    tpu.vector_store %arg6[%c1_134, %c0_135, %c0_136], %297 {strides = array<i32>} : memref<2x8x256xf32, #tpu.memory_space<vmem>>, vector<1x8x256xf32>,
    %c1_137 = arith.constant 1 : index
    %c0_138 = arith.constant 0 : index
    %c0_139 = arith.constant 0 : index
    %298 = vector.load %arg7[%c1_137, %c0_138, %c0_139] : memref<2x8x256xf32, #tpu.memory_space<vmem>>, vector<1x8x256xf32>
    %299 = vector.shape_cast %298 : vector<1x8x256xf32> to vector<8x256xf32>
    %300 = vector.shape_cast %292 : vector<8x256xf32> to vector<1x8x256xf32>
    tpu.vector_store %arg7[%c1_137, %c0_138, %c0_139], %300 {strides = array<i32>} : memref<2x8x256xf32, #tpu.memory_space<vmem>>, vector<1x8x256xf32>,
    return
  }
  func.func @transform_0(%arg0: i32) -> (i32, i32, i32) {
    %c0_i32 = arith.constant 0 : i32
    %c0_i32_0 = arith.constant 0 : i32
    %c0_i32_1 = arith.constant 0 : i32
    %c0_i32_2 = arith.constant 0 : i32
    return %c0_i32, %c0_i32_0, %c0_i32_1 : i32, i32, i32
  }
  func.func @transform_1(%arg0: i32) -> (i32, i32, i32) {
    %c0_i32 = arith.constant 0 : i32
    %c0_i32_0 = arith.constant 0 : i32
    %c0_i32_1 = arith.constant 0 : i32
    %c0_i32_2 = arith.constant 0 : i32
    return %c0_i32, %c0_i32_0, %c0_i32_1 : i32, i32, i32
  }
  func.func @transform_2(%arg0: i32) -> (i32, i32, i32) {
    %c0_i32 = arith.constant 0 : i32
    %c0_i32_0 = arith.constant 0 : i32
    %c0_i32_1 = arith.constant 0 : i32
    %c0_i32_2 = arith.constant 0 : i32
    return %c0_i32, %c0_i32_0, %c0_i32_1 : i32, i32, i32
  }
  func.func @transform_3(%arg0: i32) -> (i32, i32) {
    %c0_i32 = arith.constant 0 : i32
    %c0_i32_0 = arith.constant 0 : i32
    %c0_i32_1 = arith.constant 0 : i32
    return %c0_i32, %c0_i32_0 : i32, i32
  }
  func.func @transform_4(%arg0: i32) -> (i32, i32) {
    %c0_i32 = arith.constant 0 : i32
    %c0_i32_0 = arith.constant 0 : i32
    %c0_i32_1 = arith.constant 0 : i32
    return %c0_i32, %c0_i32_0 : i32, i32
  }
  func.func @transform_5(%arg0: i32) -> (i32, i32, i32) {
    %c0_i32 = arith.constant 0 : i32
    %c0_i32_0 = arith.constant 0 : i32
    %c0_i32_1 = arith.constant 0 : i32
    %c0_i32_2 = arith.constant 0 : i32
    return %c0_i32, %c0_i32_0, %c0_i32_1 : i32, i32, i32
  }
  func.func @transform_6(%arg0: i32) -> (i32, i32, i32) {
    %c0_i32 = arith.constant 0 : i32
    %c0_i32_0 = arith.constant 0 : i32
    %c0_i32_1 = arith.constant 0 : i32
    %c0_i32_2 = arith.constant 0 : i32
    return %c0_i32, %c0_i32_0, %c0_i32_1 : i32, i32, i32
  }
}

</mosaic_0001>

<bundles_post_ra>
// kernel: conv_lstm_cell.1
= control target key start
LH: loop header
LB: loop body
LE: loop exit
PB: predicated region body
PF: predicated region fallthrough
CT: control target
= control target key end

     0   :  { %v94_v0 = vlaneseq  ;;  %v1385_v2 = vmov 0.0   ;;  %s1386_s25 = smov 112   ;;  %s1387_s26 = smov 127   ;;  %vm477_vm4 = vcmask 924672   ;;  %vm534_vm5 = vcmask 916480   ;;  %s2303_s1 = inlined_call_operand.vmem [shape: f32[2,8,256], index: 1, kind: input, shape index: {}]   ;;  %s2304_s0 = inlined_call_operand.vmem [shape: f32[2,4,256], index: 0, kind: input, shape index: {}]   ;;  %s2305_s3 = inlined_call_operand.vmem [shape: f32[32,144], index: 3, kind: input, shape index: {}]   ;;  %s2306_s4 = inlined_call_operand.vmem [shape: f32[32,1], index: 4, kind: input, shape index: {}]   ;;  %s2307_s2 = inlined_call_operand.vmem [shape: f32[2,8,256], index: 2, kind: input, shape index: {}]   ;;  %s2308_s6 = inlined_call_operand.vmem [shape: f32[2,8,256], index: 6, kind: output, shape index: {1}]   ;;  %s2309_s5 = inlined_call_operand.vmem [shape: f32[2,8,256], index: 5, kind: output, shape index: {0}]  }
   0x1   :  { %v1433_v1 = vld [vmem:[%s2303_s1 + $0x8] sm:$0xff]  ;;  %22 = vst [vmem:[#allocation2] sm:$0xff] %v1385_v2  ;;  %v1439_v3 = vld [vmem:[%s2303_s1] sm:$0xff]  ;;  %s1388_s27 = smov 113   ;;  %s1389_s28 = smov 1   ;;  %v1649_v60 = vld [vmem:[%s2303_s1 + $0x18] sm:$0xff] }
   0x2   :  { %528 = vrot.lane.b32.xlu0 %v1433_v1, %s1386_s25  ;;  %526 = vrot.lane.b32.xlu2 %v1439_v3, %s1386_s25  ;;  %v1445_v4 = vand.u32 127, %v94_v0  ;;  %24 = vst [vmem:[#allocation2 + $0x10] sm:$0xff] %v1385_v2  ;;  %v1536_v14 = vld [vmem:[%s2304_s0] sm:$0xff]  ;;  %v1542_v15 = vld [vmem:[%s2304_s0 + $0x8] sm:$0xff]  ;;  %s1390_s0 = smov 15   ;;  %s1391_s9 = smov 16  }
   0x3   :  { %25 = vst [vmem:[#allocation2 + $0x18] sm:$0xff] %v1385_v2  ;;  %s1392_s10 = smov 111   ;;  %s1393_s11 = smov 17   ;;  %v1659_v63 = vld [vmem:[%s2303_s1 + $0x10] sm:$0xff]  ;;  %vm420_vm6 = vcmask 1039360   ;;  %vm350_vm7 = vcmask 1047560  }
   0x4   :  { %v96_v5 = vadd.s32 128, %v1445_v4  ;;  %26 = vst [vmem:[#allocation2 + $0x20] sm:$0xff] %v1385_v2  ;;  %v101_v7 = vand.u32 15, %v1445_v4  ;;  %vm2313_vm8 = vcmask 7168   ;;  %vm252_vm9 = vcmask 1043584  }
   0x5   :  { %28 = vst [vmem:[#allocation2 + $0x30] sm:$0xff] %v1385_v2  ;;  %vm285_vm10 = vcmask 121856   ;;  %vm330_vm11 = vcmask 1043576   ;;  %vm388_vm12 = vcmask 1043464   ;;  %vm219_vm13 = vcmask 130048  }
   0x6   :  { %v108_v6 = vand.u32 15, %v96_v5  ;;  %29 = vst [vmem:[#allocation2 + $0x38] sm:$0xff] %v1385_v2  ;;  %v1465_v10 = vadd.s32 1, %v101_v7  ;;  %v1546_v16 = vadd.s32 4294967295, %v101_v7  ;;  %vm2310_vm14 = vcmask 1047680  }
   0x7   :  { %30 = vst [vmem:[#allocation2 + $0x40] sm:$0xff] %v1385_v2  ;;  %vm2312_vm15 = vcmask 1047672  }
   0x8   :  { %v1455_v8 = vadd.s32 4294967295, %v108_v6  ;;  %v1457_v9 = vadd.s32 1, %v108_v6  ;;  %32 = vst [vmem:[#allocation2 + $0x50] sm:$0xff] %v1385_v2  ;;  %vm131_vm2 = vcmp.lt.s32.totalorder %v1465_v10, 16  ;;  %vm259_vm3 = vcmp.ge.s32.totalorder %v1546_v16, 0 }
   0x9   :  { %33 = vst [vmem:[#allocation2 + $0x58] sm:$0xff] %v1385_v2  ;;  %v1492_v13 = vsel %vm131_vm2, %v1439_v3, 0.0  ;;  %v1554_v17 = vsel %vm259_vm3, %v1439_v3, 0.0 }
   0xa   :  { %vm260_vm0 = vcmp.ge.s32.totalorder %v1455_v8, 0  ;;  %vm132_vm1 = vcmp.lt.s32.totalorder %v1457_v9, 16  ;;  %34 = vst [vmem:[#allocation2 + $0x60] sm:$0xff] %v1385_v2 }
   0xb   :  { %v1471_v11 = vsel %vm260_vm0, %v1433_v1, 0.0  ;;  %v1476_v12 = vsel %vm132_vm1, %v1433_v1, 0.0  ;;  %36 = vst [vmem:[#allocation2 + $0x70] sm:$0xff] %v1385_v2 }
   0xc   :  { %414 = vrot.lane.b32.xlu0 %v1471_v11, %s1387_s26  ;;  %471 = vrot.lane.b32.xlu2 %v1476_v12, %s1388_s27  ;;  %37 = vst [vmem:[#allocation2 + $0x78] sm:$0xff] %v1385_v2 }
   0xd   :  { %40 = vst [vmem:[#allocation2 + $0x90] sm:$0xff] %v1385_v2 }
   0xe   :  { %41 = vst [vmem:[#allocation2 + $0x98] sm:$0xff] %v1385_v2 }
   0xf   :  { %43 = vst [vmem:[#allocation2 + $0xa8] sm:$0xff] %v1385_v2 }
  0x10   :  { %44 = vst [vmem:[#allocation2 + $0xb0] sm:$0xff] %v1385_v2 }
  0x11   :  { %45 = vst [vmem:[#allocation2 + $0xb8] sm:$0xff] %v1385_v2 }
  0x12   :  { %47 = vst [vmem:[#allocation2 + $0xc8] sm:$0xff] %v1385_v2 }
  0x13   :  { %48 = vst [vmem:[#allocation2 + $0xd0] sm:$0xff] %v1385_v2 }
  0x14   :  { %337 = vrot.lane.b32.xlu0 %v1476_v12, %s1389_s28  ;;  %469 = vrot.lane.b32.xlu2 %v1492_v13, %s1388_s27  ;;  %49 = vst [vmem:[#allocation2 + $0xd8] sm:$0xff] %v1385_v2 }
  0x15   :  { %51 = vst [vmem:[#allocation2 + $0xe8] sm:$0xff] %v1385_v2 }
  0x16   :  { %52 = vst [vmem:[#allocation2 + $0xf0] sm:$0xff] %v1385_v2 }
  0x17   :  { %53 = vst [vmem:[#allocation2 + $0xf8] sm:$0xff] %v1385_v2 }
  0x18   :  { %55 = vst [vmem:[#allocation2 + $0x108] sm:$0xff] %v1385_v2 }
  0x19   :  { %56 = vst [vmem:[#allocation2 + $0x110] sm:$0xff] %v1385_v2 }
  0x1a   :  { %57 = vst [vmem:[#allocation2 + $0x118] sm:$0xff] %v1385_v2 }
  0x1b   :  { %58 = vst [vmem:[#allocation2 + $0x120] sm:$0xff] %v1385_v2 }
  0x1c   :  { %60 = vst [vmem:[#allocation2 + $0x130] sm:$0xff] %v1385_v2  ;;  %412 = vrot.lane.b32.xlu2 %v1554_v17, %s1387_s26 }
  0x1d   :  { %61 = vst [vmem:[#allocation2 + $0x138] sm:$0xff] %v1385_v2 }
  0x1e   :  { %62 = vst [vmem:[#allocation2 + $0x140] sm:$0xff] %v1385_v2 }
  0x1f   :  { %64 = vst [vmem:[#allocation2 + $0x150] sm:$0xff] %v1385_v2 }
  0x20   :  { %65 = vst [vmem:[#allocation2 + $0x158] sm:$0xff] %v1385_v2 }
  0x21   :  { %66 = vst [vmem:[#allocation2 + $0x160] sm:$0xff] %v1385_v2 }
  0x22   :  { %68 = vst [vmem:[#allocation2 + $0x170] sm:$0xff] %v1385_v2 }
  0x23   :  { %69 = vst [vmem:[#allocation2 + $0x178] sm:$0xff] %v1385_v2 }
  0x24   :  { %70 = vst [vmem:[#allocation2 + $0x180] sm:$0xff] %v1385_v2  ;;  %335 = vrot.lane.b32.xlu2 %v1492_v13, %s1389_s28 }
  0x25   :  { %72 = vst [vmem:[#allocation2 + $0x190] sm:$0xff] %v1385_v2 }
  0x26   :  { %73 = vst [vmem:[#allocation2 + $0x198] sm:$0xff] %v1385_v2 }
  0x27   :  { %76 = vst [vmem:[#allocation2 + $0x1b0] sm:$0xff] %v1385_v2 }
  0x28   :  { %77 = vst [vmem:[#allocation2 + $0x1b8] sm:$0xff] %v1385_v2 }
  0x29   :  { %79 = vst [vmem:[#allocation2 + $0x1c8] sm:$0xff] %v1385_v2 }
  0x2a   :  { %80 = vst [vmem:[#allocation2 + $0x1d0] sm:$0xff] %v1385_v2 }
  0x2b   :  { %81 = vst [vmem:[#allocation2 + $0x1d8] sm:$0xff] %v1385_v2 }
  0x2c   :  { %83 = vst [vmem:[#allocation2 + $0x1e8] sm:$0xff] %v1385_v2 }
  0x2d   :  { %84 = vst [vmem:[#allocation2 + $0x1f0] sm:$0xff] %v1385_v2 }
  0x2e   :  { %85 = vst [vmem:[#allocation2 + $0x1f8] sm:$0xff] %v1385_v2 }
  0x2f   :  { %87 = vst [vmem:[#allocation2 + $0x208] sm:$0xff] %v1385_v2 }
  0x30   :  { %88 = vst [vmem:[#allocation2 + $0x210] sm:$0xff] %v1385_v2 }
  0x31   :  { %89 = vst [vmem:[#allocation2 + $0x218] sm:$0xff] %v1385_v2 }
  0x32   :  { %91 = vst [vmem:[#allocation2 + $0x228] sm:$0xff] %v1385_v2 }
  0x33   :  { %92 = vst [vmem:[#allocation2 + $0x230] sm:$0xff] %v1385_v2 }
  0x34   :  { %93 = vst [vmem:[#allocation2 + $0x238] sm:$0xff] %v1385_v2 }
  0x35   :  { %169 = vst [vmem:[#allocation1] ss:$2 sm:$0xff] %v1536_v14 }
  0x36   :  { %173 = vst [vmem:[#allocation1 + $0x10] ss:$2 sm:$0xff] %v1542_v15 }
  0x3c   :  { %v1558_v18 = vld.sshfl [vmem:[#allocation1] sm:$0xff pattern:$0x75316420]  ;;  %v1560_v19 = vld.sshfl [vmem:[#allocation1 + $0x8] sm:$0xff pattern:$0x75316420] }
  0x3d   :  { %v1562_v20 = vld.sshfl [vmem:[#allocation1 + $0x10] sm:$0xff pattern:$0x75316420]  ;;  %v1564_v21 = vld.sshfl [vmem:[#allocation1 + $0x18] sm:$0xff pattern:$0x75316420] }
  0x3e   :  { %231 = vst [vmem:[#allocation1] ss:$2 sm:$0xff] %v1536_v14  ;;  %v181_v56 = vsel %vm132_vm1, %v1560_v19, 0.0  ;;  %v180_v59 = vsel %vm131_vm2, %v1558_v18, 0.0  ;;  %v183_v10 = vsel %vm132_vm1, %v1564_v21, 0.0 }
  0x3f   :  { %235 = vst [vmem:[#allocation1 + $0x10] ss:$2 sm:$0xff] %v1542_v15 }
  0x45   :  { %v232_v22 = vld.sshfl [vmem:[#allocation1] sm:$0xff pattern:$0x75316420]  ;;  %v233_v23 = vld.sshfl [vmem:[#allocation1 + $0x8] sm:$0xff pattern:$0x75316420] }
  0x46   :  { %v1570_v24 = vld.sshfl [vmem:[#allocation1 + $0x10] sm:$0xff pattern:$0x75316420]  ;;  %v1572_v25 = vld.sshfl [vmem:[#allocation1 + $0x18] sm:$0xff pattern:$0x75316420] }
  0x47   :  { %297 = vst [vmem:[#allocation1] ss:$2 sm:$0xff] %v1536_v14 }
  0x48   :  { %301 = vst [vmem:[#allocation1 + $0x10] ss:$2 sm:$0xff] %v1542_v15 }
  0x4e   :  { %v298_v26 = vld.sshfl [vmem:[#allocation1] sm:$0xff pattern:$0x75316420]  ;;  %v299_v27 = vld.sshfl [vmem:[#allocation1 + $0x8] sm:$0xff pattern:$0x75316420] }
  0x4f   :  { %v1576_v28 = vld.sshfl [vmem:[#allocation1 + $0x10] sm:$0xff pattern:$0x75316420]  ;;  %v1578_v29 = vld.sshfl [vmem:[#allocation1 + $0x18] sm:$0xff pattern:$0x75316420] }
  0x50   :  { %v308_v30 = vsel %vm259_vm3, %v298_v26, 0.0  ;;  %355 = vst [vmem:[#allocation1] ss:$2 sm:$0xff] %v1536_v14  ;;  %v309_v31 = vsel %vm260_vm0, %v299_v27, 0.0 }
  0x51   :  { %359 = vst [vmem:[#allocation1 + $0x10] ss:$2 sm:$0xff] %v1542_v15  ;;  %316 = vrot.lane.b32.xlu1 %v308_v30, %s1390_s0  ;;  %318 = vrot.lane.b32.xlu2 %v309_v31, %s1390_s0 }
  0x57   :  { %v356_v32 = vld.sshfl [vmem:[#allocation1] sm:$0xff pattern:$0x75316420]  ;;  %v357_v33 = vld.sshfl [vmem:[#allocation1 + $0x8] sm:$0xff pattern:$0x75316420] }
  0x58   :  { %v1588_v34 = vld.sshfl [vmem:[#allocation1 + $0x10] sm:$0xff pattern:$0x75316420]  ;;  %v1590_v35 = vld.sshfl [vmem:[#allocation1 + $0x18] sm:$0xff pattern:$0x75316420] }
  0x59   :  { %401 = vst [vmem:[#allocation1 + $0x10] ss:$2 sm:$0xff] %v1542_v15  ;;  %v366_v36 = vsel %vm131_vm2, %v356_v32, 0.0  ;;  %279 = vrot.lane.b32.xlu1 %v1471_v11, %s1390_s0  ;;  %238 = vrot.lane.b32.xlu2 %v232_v22, %s1391_s9  ;;  %v367_v41 = vsel %vm132_vm1, %v357_v33, 0.0  ;;  %v1692_v22 = vsel %vm131_vm2, %v1659_v63, 0.0  ;;  %v271_v32 = vsel %vm259_vm3, %v1659_v63, 0.0 }
  0x5a   :  { %374 = vrot.lane.b32.xlu0 %v366_v36, %s1389_s28  ;;  %397 = vst [vmem:[#allocation1] ss:$2 sm:$0xff] %v1536_v14  ;;  %v368_v36 = vsel %vm131_vm2, %v1588_v34, 0.0  ;;  %v272_v34 = vsel %vm260_vm0, %v1649_v60, 0.0 }
  0x5c   :  { %v527_v55 = vpop.permute.xlu2 %526 }
  0x60   :  { %v402_v37 = vld.sshfl [vmem:[#allocation1 + $0x10] sm:$0xff pattern:$0x75316420]  ;;  %v403_v38 = vld.sshfl [vmem:[#allocation1 + $0x18] sm:$0xff pattern:$0x75316420] }
  0x61   :  { %435 = vst [vmem:[#allocation1 + $0x10] ss:$2 sm:$0xff] %v1542_v15  ;;  %211 = vrot.lane.b32.xlu1 %v1439_v3, %s1391_s9  ;;  %v398_v39 = vld.sshfl [vmem:[#allocation1] sm:$0xff pattern:$0x75316420]  ;;  %213 = vrot.lane.b32.xlu2 %v1433_v1, %s1391_s9 }
  0x62   :  { %410 = vst [vmem:[#allocation2 + $0x1b0] sm:$0xf] %v402_v37  ;;  %277 = vrot.lane.b32.xlu0 %v1554_v17, %s1390_s0  ;;  %v399_v40 = vld.sshfl [vmem:[#allocation1 + $0x8] sm:$0xff pattern:$0x75316420] }
  0x63   :  { %411 = vst [vmem:[#allocation2 + $0x1b8] sm:$0xf] %v403_v38  ;;  %v310_v38 = vsel %vm259_vm3, %v1576_v28, 0.0  ;;  %v311_v28 = vsel %vm260_vm0, %v1578_v29, 0.0 }
  0x64   :  { %431 = vst [vmem:[#allocation1] ss:$2 sm:$0xff] %v1536_v14 }
  0x65   :  { %408 = vst [vmem:[#allocation2 + $0x90] sm:$0xf] %v398_v39 }
  0x66   :  { %409 = vst [vmem:[#allocation2 + $0x98] sm:$0xf] %v399_v40  ;;  %v472_v58 = vpop.permute.xlu2 %471 }
  0x67   :  { %485 = vst.msk [vmem:[#allocation2 + $0xc8] sm:$0xff] %vm477_vm4, %v472_v58 }
  0x68   :  { %v1613_v44 = vld.sshfl [vmem:[#allocation1 + $0x10] sm:$0xff pattern:$0x75316420]  ;;  %v1615_v45 = vld.sshfl [vmem:[#allocation1 + $0x18] sm:$0xff pattern:$0x75316420] }
  0x69   :  { %376 = vrot.lane.b32.xlu1 %v367_v41, %s1389_s28  ;;  %492 = vst [vmem:[#allocation1 + $0x10] ss:$2 sm:$0xff] %v1542_v15  ;;  %190 = vrot.lane.b32.xlu2 %v181_v56, %s1393_s11  ;;  %v445_v30 = vsel %vm260_vm0, %v1615_v45, 0.0  ;;  %v444_v37 = vsel %vm259_vm3, %v1613_v44, 0.0  ;;  %v369_v41 = vsel %vm132_vm1, %v1590_v35, 0.0 }
  0x6a   :  { %240 = vrot.lane.b32.xlu0 %v233_v23, %s1391_s9 }
  0x6b   :  { %v432_v42 = vld.sshfl [vmem:[#allocation1] sm:$0xff pattern:$0x75316420]  ;;  %v433_v43 = vld.sshfl [vmem:[#allocation1 + $0x8] sm:$0xff pattern:$0x75316420] }
  0x6c   :  { %488 = vst [vmem:[#allocation1] ss:$2 sm:$0xff] %v1536_v14  ;;  %v443_v46 = vsel %vm260_vm0, %v433_v43, 0.0  ;;  %v442_v52 = vsel %vm259_vm3, %v432_v42, 0.0 }
  0x6e   :  { %v470_v0 = vpop.permute.xlu2 %469 }
  0x6f   :  { %v1663_v2 = vsel %vm477_vm4, %v470_v0, %v472_v58 }
  0x70   :  { %v493_v50 = vld.sshfl [vmem:[#allocation1 + $0x10] sm:$0xff pattern:$0x75316420]  ;;  %v1625_v51 = vld.sshfl [vmem:[#allocation1 + $0x18] sm:$0xff pattern:$0x75316420] }
  0x71   :  { %452 = vrot.lane.b32.xlu1 %v443_v46, %s1387_s26  ;;  %549 = vst [vmem:[#allocation1 + $0x10] ss:$2 sm:$0xff] %v1542_v15  ;;  %147 = vrot.lane.b32.xlu2 %v1492_v13, %s1393_s11  ;;  %v501_v19 = vsel %vm131_vm2, %v493_v50, 0.0  ;;  %v502_v31 = vsel %vm132_vm1, %v1625_v51, 0.0 }
  0x73   :  { %v489_v47 = vld.sshfl [vmem:[#allocation1] sm:$0xff pattern:$0x75316420]  ;;  %v490_v48 = vld.sshfl [vmem:[#allocation1 + $0x8] sm:$0xff pattern:$0x75316420] }
  0x74   :  { %v499_v49 = vsel %vm131_vm2, %v489_v47, 0.0  ;;  %545 = vst [vmem:[#allocation1] ss:$2 sm:$0xff] %v1536_v14  ;;  %v500_v57 = vsel %vm132_vm1, %v490_v48, 0.0  ;;  %v529_v7 = vpop.permute.xlu0 %528 }
  0x75   :  { %507 = vrot.lane.b32.xlu0 %v499_v49, %s1388_s27  ;;  %542 = vst.msk [vmem:[#allocation2 + $0xe8] sm:$0xff] %vm534_vm5, %v529_v7 }
  0x78   :  { %v551_v5 = vld.sshfl [vmem:[#allocation1 + $0x18] sm:$0xff pattern:$0x75316420]  ;;  %v550_v6 = vld.sshfl [vmem:[#allocation1 + $0x10] sm:$0xff pattern:$0x75316420] }
  0x79   :  { %450 = vrot.lane.b32.xlu1 %v442_v52, %s1387_s26  ;;  %556 = vrot.lane.b32.xlu2 %v550_v6, %s1386_s25  ;;  %594 = vst [vmem:[#allocation1 + $0x10] ss:$2 sm:$0xff] %v1542_v15  ;;  %v182_v52 = vsel %vm131_vm2, %v1562_v20, 0.0  ;;  %vm2311_vm2 = vcmask 1047688  }
  0x7b   :  { %v546_v53 = vld.sshfl [vmem:[#allocation1] sm:$0xff pattern:$0x75316420]  ;;  %v547_v54 = vld.sshfl [vmem:[#allocation1 + $0x8] sm:$0xff pattern:$0x75316420] }
  0x7c   :  { %590 = vst [vmem:[#allocation1] ss:$2 sm:$0xff] %v1536_v14  ;;  %v1673_v14 = vsel %vm534_vm5, %v527_v55, %v529_v7  ;;  %v689_v7 = vld [vmem:[#allocation2 + $0xe8] sm:$0xff] }
  0x7d   :  { %573 = vrot.lane.b32.xlu0 %v1471_v11, %s1392_s10  ;;  %v413_v11 = vpop.permute.xlu2 %412 }
  0x80   :  { %v595_v42 = vld.sshfl [vmem:[#allocation1 + $0x10] sm:$0xff pattern:$0x75316420]  ;;  %v596_v46 = vld.sshfl [vmem:[#allocation1 + $0x18] sm:$0xff pattern:$0x75316420] }
  0x81   :  { %509 = vrot.lane.b32.xlu1 %v500_v57, %s1388_s27  ;;  %532 = vrot.lane.b32.xlu2 %v1649_v60, %s1386_s25  ;;  %v603_v43 = vsel %vm259_vm3, %v595_v42, 0.0 }
  0x83   :  { %v592_v61 = vld.sshfl [vmem:[#allocation1 + $0x8] sm:$0xff pattern:$0x75316420]  ;;  %v591_v4 = vld.sshfl [vmem:[#allocation1] sm:$0xff pattern:$0x75316420] }
  0x84   :  { %v602_v62 = vsel %vm260_vm0, %v592_v61, 0.0  ;;  %v601_v13 = vsel %vm259_vm3, %v591_v4, 0.0  ;;  %vm579_vm3 = vcmask 908288  }
  0x85   :  { %554 = vrot.lane.b32.xlu0 %v547_v54, %s1386_s25  ;;  %v336_v18 = vpop.permute.xlu2 %335 }
  0x86   :  { %351 = vst.msk [vmem:[#allocation2 + $0x60] sm:$0xff] %vm350_vm7, %v336_v18 }
  0x89   :  { %188 = vrot.lane.b32.xlu1 %v180_v59, %s1393_s11  ;;  %473 = vrot.lane.b32.xlu2 %v1692_v22, %s1388_s27 }
  0x8d   :  { %611 = vrot.lane.b32.xlu0 %v602_v62, %s1392_s10 }
  0x91   :  { %552 = vrot.lane.b32.xlu1 %v546_v53, %s1386_s25  ;;  %456 = vrot.lane.b32.xlu2 %v445_v30, %s1387_s26 }
  0x95   :  { %149 = vrot.lane.b32.xlu0 %v1476_v12, %s1393_s11  ;;  %v415_v12 = vpop.permute.xlu0 %414 }
  0x96   :  { %v1681_v15 = vsel %vm420_vm6, %v413_v11, %v415_v12  ;;  %428 = vst.msk [vmem:[#allocation2 + $0xa8] sm:$0xff] %vm420_vm6, %v415_v12 }
  0x99   :  { %609 = vrot.lane.b32.xlu1 %v601_v13, %s1392_s10  ;;  %378 = vrot.lane.b32.xlu2 %v368_v36, %s1389_s28 }
  0x9d   :  { %558 = vrot.lane.b32.xlu0 %v551_v5, %s1386_s25  ;;  %v338_v23 = vpop.permute.xlu0 %337 }
  0x9e   :  { %v1698_v26 = vsel %vm2313_vm8, %v336_v18, %v338_v23  ;;  %v685_v18 = vld [vmem:[#allocation2 + $0xc8] sm:$0xff] }
  0xa1   :  { %571 = vrot.lane.b32.xlu1 %v1554_v17, %s1392_s10  ;;  %v1705_v17 = vsel %vm132_vm1, %v1649_v60, 0.0  ;;  %320 = vrot.lane.b32.xlu2 %v310_v38, %s1390_s0  ;;  %vm522_vm1 = vcmask 920576  }
  0xa5   :  { %511 = vrot.lane.b32.xlu0 %v501_v19, %s1388_s27 }
  0xa9   :  { %530 = vrot.lane.b32.xlu1 %v1659_v63, %s1386_s25  ;;  %322 = vrot.lane.b32.xlu2 %v311_v28, %s1390_s0 }
  0xab   :  { %v319_v27 = vpop.permute.xlu2 %318 }
  0xad   :  { %475 = vrot.lane.b32.xlu0 %v1705_v17, %s1388_s27 }
  0xb1   :  { %513 = vrot.lane.b32.xlu1 %v502_v31, %s1388_s27  ;;  %242 = vrot.lane.b32.xlu2 %v1570_v24, %s1391_s9  ;;  %v604_v24 = vsel %vm260_vm0, %v596_v46, 0.0  ;;  %vm465_vm0 = vcmask 1035264   ;;  %v681_v31 = vld [vmem:[#allocation2 + $0xa8] sm:$0xff] }
  0xb3   :  { %v239_v33 = vpop.permute.xlu2 %238 }
  0xb4   :  { %253 = vst.msk [vmem:[#allocation2 + $0x30] sm:$0xf] %vm252_vm9, %v239_v33 }
  0xb5   :  { %416 = vrot.lane.b32.xlu0 %v271_v32, %s1387_s26 }
  0xb9   :  { %454 = vrot.lane.b32.xlu1 %v444_v37, %s1387_s26  ;;  %577 = vrot.lane.b32.xlu2 %v272_v34, %s1392_s10 }
  0xbb   :  { %v214_v29 = vpop.permute.xlu2 %213 }
  0xbd   :  { %339 = vrot.lane.b32.xlu0 %v1692_v22, %s1389_s28 }
  0xc1   :  { %418 = vrot.lane.b32.xlu1 %v272_v34, %s1387_s26  ;;  %192 = vrot.lane.b32.xlu2 %v182_v52, %s1393_s11 }
  0xc3   :  { %v317_v39 = vpop.permute.xlu1 %316  ;;  %v191_v54 = vpop.permute.xlu2 %190 }
  0xc4   :  { %v324_v40 = vsel %vm285_vm10, %v317_v39, %v319_v27  ;;  %331 = vst.msk [vmem:[#allocation2 + $0x50] sm:$0xf] %vm330_vm11, %v317_v39 }
  0xc5   :  { %341 = vrot.lane.b32.xlu0 %v1705_v17, %s1389_s28  ;;  %332 = vst [vmem:[#allocation2 + $0x58] sm:$0xf] %v324_v40 }
  0xc9   :  { %380 = vrot.lane.b32.xlu1 %v369_v41, %s1389_s28  ;;  %194 = vrot.lane.b32.xlu2 %v183_v10, %s1393_s11 }
  0xcb   :  { %v280_v44 = vpop.permute.xlu1 %279  ;;  %v148_v55 = vpop.permute.xlu2 %147  ;;  %v670_v52 = vld [vmem:[#allocation2 + $0x50] sm:$0xff] }
  0xcc   :  { %v375_v45 = vpop.permute.xlu0 %374  ;;  %163 = vst.msk [vmem:[#allocation2] sm:$0xff] %vm2311_vm2, %v148_v55  ;;  %vm155_vm2 = vcmask 138240  }
  0xcd   :  { %613 = vrot.lane.b32.xlu0 %v603_v43, %s1392_s10  ;;  %389 = vst.msk [vmem:[#allocation2 + $0x70] sm:$0xf] %vm388_vm12, %v375_v45 }
  0xd1   :  { %281 = vrot.lane.b32.xlu1 %v271_v32, %s1390_s0 }
  0xd3   :  { %v212_v35 = vpop.permute.xlu1 %211  ;;  %v557_v21 = vpop.permute.xlu2 %556 }
  0xd4   :  { %v278_v16 = vpop.permute.xlu0 %277  ;;  %v1760_v47 = vsel %vm219_vm13, %v212_v35, %v214_v29  ;;  %227 = vst.msk [vmem:[#allocation2 + $0x20] sm:$0xff] %vm2310_vm14, %v212_v35  ;;  %vm567_vm14 = vcmask 912384  }
  0xd5   :  { %283 = vrot.lane.b32.xlu0 %v272_v34, %s1390_s0  ;;  %v1765_v48 = vsel %vm285_vm10, %v278_v16, %v280_v44  ;;  %293 = vst.msk [vmem:[#allocation2 + $0x40] sm:$0xff] %vm2312_vm15, %v278_v16  ;;  %vm202_vm15 = vcmask 1043592   ;;  %v678_v44 = vld [vmem:[#allocation2 + $0x90] sm:$0xff] }
  0xd9   :  { %615 = vrot.lane.b32.xlu1 %v604_v24, %s1392_s10  ;;  %v1850_v24 = vld [vmem:[%s2305_s3] sm:$0xff] }
  0xdb   :  { %v377_v49 = vpop.permute.xlu1 %376  ;;  %v1802_v61 = vpop.permute.xlu2 %532 }
  0xdc   :  { %v241_v50 = vpop.permute.xlu0 %240  ;;  %v382_v51 = vsel %vm2313_vm8, %v375_v45, %v377_v49  ;;  %544 = vst.msk [vmem:[#allocation2 + $0x208] sm:$0xff] %vm534_vm5, %v1802_v61  ;;  %vm624_vm8 = vcmask 904192  }
  0xdd   :  { %v246_v53 = vsel %vm219_vm13, %v239_v33, %v241_v50  ;;  %390 = vst [vmem:[#allocation2 + $0x78] sm:$0xf] %v382_v51  ;;  %215 = vrot.lane.b32.xlu0 %v1659_v63, %s1391_s9  ;;  %v1856_v50 = vld [vmem:[%s2305_s3 + $0x18] sm:$0xff] }
  0xde   :  { %254 = vst [vmem:[#allocation2 + $0x38] sm:$0xf] %v246_v53 }
  0xe1   :  { %575 = vrot.lane.b32.xlu1 %v271_v32, %s1392_s10  ;;  %v679_v32 = vld [vmem:[#allocation2 + $0x98] sm:$0xff] }
  0xe3   :  { %v453_v8 = vpop.permute.xlu1 %452  ;;  %v1809_v6 = vpop.permute.xlu2 %473 }
  0xe4   :  { %466 = vst.msk [vmem:[#allocation2 + $0xb8] sm:$0xf] %vm465_vm0, %v453_v8  ;;  %v675_v34 = vld [vmem:[#allocation2 + $0x78] sm:$0xff] }
  0xe5   :  { %217 = vrot.lane.b32.xlu0 %v1649_v60, %s1391_s9 }
  0xe7   :  { %v508_v20 = vpop.permute.xlu0 %507 }
  0xe9   :  { %244 = vrot.lane.b32.xlu1 %v1572_v25, %s1391_s9 }
  0xeb   :  { %v451_v56 = vpop.permute.xlu1 %450  ;;  %v1813_v27 = vpop.permute.xlu2 %456 }
  0xec   :  { %v458_v57 = vsel %vm420_vm6, %v451_v56, %v453_v8  ;;  %468 = vst.msk [vmem:[#allocation2 + $0x1d8] sm:$0xf] %vm465_vm0, %v1813_v27  ;;  %v664_v56 = vld [vmem:[#allocation2 + $0x20] sm:$0xff] }
  0xed   :  { %464 = vst [vmem:[#allocation2 + $0xb0] sm:$0xf] %v458_v57  ;;  %153 = vrot.lane.b32.xlu0 %v1705_v17, %s1393_s11 }
  0xef   :  { %v1794_v9 = vpop.permute.xlu0 %573 }
  0xf0   :  { %587 = vst.msk [vmem:[#allocation2 + $0x108] sm:$0xff] %vm579_vm3, %v1794_v9 }
  0xf1   :  { %151 = vrot.lane.b32.xlu1 %v1692_v22, %s1393_s11  ;;  %v683_v22 = vld [vmem:[#allocation2 + $0xb8] sm:$0xff] }
  0xf3   :  { %v510_v25 = vpop.permute.xlu1 %509  ;;  %v1821_v39 = vpop.permute.xlu2 %378 }
  0xf4   :  { %v515_v58 = vsel %vm477_vm4, %v508_v20, %v510_v25  ;;  %523 = vst.msk [vmem:[#allocation2 + $0xd8] sm:$0xf] %vm522_vm1, %v510_v25  ;;  %v682_v42 = vld [vmem:[#allocation2 + $0xb0] sm:$0xff]  ;;  %v660_v25 = vld [vmem:[#allocation2] sm:$0xff] }
  0xf5   :  { %521 = vst [vmem:[#allocation2 + $0xd0] sm:$0xf] %v515_v58  ;;  %v666_v20 = vld [vmem:[#allocation2 + $0x30] sm:$0xff]  ;;  %v1881_v58 = vld [vmem:[%s2305_s3 + $0x28] sm:$0xff] }
  0xf6   :  { %391 = vst.msk [vmem:[#allocation2 + $0x190] sm:$0xf] %vm388_vm12, %v1821_v39 }
  0xf7   :  { %v555_v59 = vpop.permute.xlu0 %554  ;;  %v693_v17 = vld [vmem:[#allocation2 + $0x108] sm:$0xff] }
  0xf8   :  { %568 = vst.msk [vmem:[#allocation2 + $0xf8] sm:$0xf] %vm567_vm14, %v555_v59 }
  0xfb   :  { %v189_v62 = vpop.permute.xlu1 %188  ;;  %v687_v11 = vld [vmem:[#allocation2 + $0xd8] sm:$0xff]  ;;  %v321_v29 = vpop.permute.xlu2 %320 }
  0xfc   :  { %v196_v0 = vsel %vm155_vm2, %v189_v62, %v191_v54  ;;  %203 = vst.msk [vmem:[#allocation2 + $0x10] sm:$0xf] %vm202_vm15, %v189_v62  ;;  %v686_v28 = vld [vmem:[#allocation2 + $0xd0] sm:$0xff]  ;;  %v668_v54 = vld [vmem:[#allocation2 + $0x40] sm:$0xff] }
  0xfd   :  { %204 = vst [vmem:[#allocation2 + $0x18] sm:$0xf] %v196_v0 }
  0xfe   :  { %333 = vst.msk [vmem:[#allocation2 + $0x170] sm:$0xf] %vm330_vm11, %v321_v29 }
  0xff   :  { %v612_v4 = vpop.permute.xlu0 %611  ;;  %v691_v5 = vld [vmem:[#allocation2 + $0xf8] sm:$0xff] }
 0x100   :  { %625 = vst.msk [vmem:[#allocation2 + $0x118] sm:$0xf] %vm624_vm8, %v612_v4  ;;  %766 = vmatpush.msra.mxu2 %v691_v5  ;;  %v1394_v5 = vmov 0  }
 0x101   :  { %1318 = vset.pattern.permute.xlu1 %v1394_v5  ;;  %1320 = vset.pattern.permute.xlu0 %v1394_v5 }
 0x102   :  { %767 = vmatpush.msra.mxu2 %v689_v7  ;;  %v1898_v7 = vld [vmem:[#allocation2 + $0x208] sm:$0xff]  ;;  %1319 = vset.pattern.permute.xlu2 %v1394_v5 }
 0x103   :  { %v553_v13 = vpop.permute.xlu1 %552 }
 0x104   :  { %768 = vmatpush.msra.mxu2 %v687_v11  ;;  %v560_v12 = vsel %vm534_vm5, %v553_v13, %v555_v59 }
 0x105   :  { %566 = vst [vmem:[#allocation2 + $0xf0] sm:$0xf] %v560_v12 }
 0x106   :  { %769 = vmatpush.msra.mxu2 %v685_v18 }
 0x107   :  { %v150_v19 = vpop.permute.xlu0 %149  ;;  %v695_v23 = vld [vmem:[#allocation2 + $0x118] sm:$0xff] }
 0x108   :  { %770 = vmatpush.msra.mxu2 %v683_v22  ;;  %809 = vmatpush.msra.mxu3 %v695_v23  ;;  %v156_v30 = vsel %vm155_vm2, %v148_v55, %v150_v19  ;;  %v1871_v55 = vld [vmem:[%s2305_s3 + $0x10] sm:$0xff]  ;;  %v1913_v19 = vld [vmem:[#allocation2 + $0x1d8] sm:$0xff] }
 0x10a   :  { %771 = vmatpush.msra.mxu2 %v681_v31  ;;  %810 = vmatpush.msra.mxu3 %v693_v17  ;;  %v975_v31 = vld [vmem:[#allocation2 + $0x1b0] sm:$0xff] }
 0x10b   :  { %v610_v33 = vpop.permute.xlu1 %609 }
 0x10c   :  { %772 = vmatpush.msra.mxu2 %v679_v32  ;;  %v617_v36 = vsel %vm579_vm3, %v610_v33, %v612_v4  ;;  %v690_v37 = vld [vmem:[#allocation2 + $0xf0] sm:$0xff]  ;;  %v1893_v4 = vld [vmem:[%s2305_s3 + $0x20] sm:$0xff] }
 0x10d   :  { %623 = vst [vmem:[#allocation2 + $0x110] sm:$0xf] %v617_v36  ;;  %708 = vmatpush.msra.mxu0 %v690_v37  ;;  %v638_v36 = vld [vmem:[%s2306_s4 + $0x10] sm:$0xff] }
 0x10e   :  { %773 = vmatpush.msra.mxu2 %v1433_v1  ;;  %v671_v1 = vld [vmem:[#allocation2 + $0x58] sm:$0xff]  ;;  %652 = vperm.xlu0 %1320, %v638_v36  }
 0x10f   :  { %v559_v38 = vpop.permute.xlu0 %558  ;;  %709 = vmatpush.msra.mxu0 %v1673_v14 }
 0x110   :  { %570 = vst.msk [vmem:[#allocation2 + $0x218] sm:$0xf] %vm567_vm14, %v559_v38  ;;  %774 = vmatpush.msra.mxu2 %v675_v34  ;;  %v561_v40 = vsel %vm534_vm5, %v557_v21, %v559_v38  ;;  %v662_v21 = vld [vmem:[#allocation2 + $0x10] sm:$0xff] }
 0x111   :  { %569 = vst [vmem:[#allocation2 + $0x210] sm:$0xf] %v561_v40  ;;  %710 = vmatpush.msra.mxu0 %v686_v28  ;;  %v971_v38 = vld [vmem:[#allocation2 + $0x190] sm:$0xff]  ;;  %v1947_v28 = vld [vmem:[#allocation2 + $0x1b8] sm:$0xff] }
 0x112   :  { %775 = vmatpush.msra.mxu2 %v1698_v26  ;;  %v667_v26 = vld [vmem:[#allocation2 + $0x38] sm:$0xff] }
 0x113   :  { %711 = vmatpush.msra.mxu0 %v1663_v2  ;;  %v572_v41 = vpop.permute.xlu1 %571  ;;  %v1836_v2 = vld [vmem:[%s2305_s3 + $0x8] sm:$0xff] }
 0x114   :  { %776 = vmatpush.msra.mxu2 %v671_v1  ;;  %v580_v14 = vsel %vm579_vm3, %v572_v41, %v1794_v9  ;;  %v694_v43 = vld [vmem:[#allocation2 + $0x110] sm:$0xff]  ;;  %1260 = vmatmul.msk.f32.vlgmr.msra.gmra.mxu3 %vm219_vm13, %v1836_v2 }
 0x115   :  { %712 = vmatpush.msra.mxu0 %v682_v42  ;;  %751 = vmatpush.msra.mxu1 %v694_v43 }
 0x116   :  { %777 = vmatpush.msra.mxu2 %v1765_v48  ;;  %v674_v48 = vld [vmem:[#allocation2 + $0x70] sm:$0xff] }
 0x117   :  { %v512_v45 = vpop.permute.xlu0 %511  ;;  %713 = vmatpush.msra.mxu0 %v1681_v15  ;;  %752 = vmatpush.msra.mxu1 %v580_v14  ;;  %v663_v15 = vld [vmem:[#allocation2 + $0x18] sm:$0xff]  ;;  %v967_v14 = vld [vmem:[#allocation2 + $0x170] sm:$0xff] }
 0x118   :  { %778 = vmatpush.msra.mxu2 %v667_v26  ;;  %v987_v35 = vld [vmem:[#allocation2 + $0x210] sm:$0xff]  ;;  %1256 = vmatmul.msk.f32.vlgmr.msra.gmra.mxu1 %vm219_vm13, %v1836_v2  ;;  %v637_v26 = vld [vmem:[%s2306_s4 + $0x8] sm:$0xff] }
 0x119   :  { %714 = vmatpush.msra.mxu0 %v678_v44  ;;  %993 = vmatpush.msrb.mxu1 %v987_v35 }
 0x11a   :  { %779 = vmatpush.msra.mxu2 %v1760_v47  ;;  %v672_v47 = vld [vmem:[#allocation2 + $0x60] sm:$0xff]  ;;  %647 = vperm.xlu2 %1319, %v637_v26  }
 0x11b   :  { %715 = vmatpush.msra.mxu0 %v1439_v3  ;;  %v531_v46 = vpop.permute.xlu1 %530  ;;  %v323_v3 = vpop.permute.xlu2 %322 }
 0x11c   :  { %780 = vmatpush.msra.mxu2 %v663_v15  ;;  %v536_v16 = vsel %vm534_vm5, %v531_v46, %v1802_v61  ;;  %v325_v53 = vsel %vm285_vm10, %v321_v29, %v323_v3  ;;  %1261 = vmatmul.msk.f32.gmra.mxu3 %vm219_vm13, %v1856_v50  ;;  %v1883_v61 = vld [vmem:[#allocation2 + $0x218] sm:$0xff] }
 0x11d   :  { %716 = vmatpush.msra.mxu0 %v674_v48  ;;  %994 = vmatpush.msrb.mxu1 %v536_v16  ;;  %334 = vst [vmem:[#allocation2 + $0x178] sm:$0xf] %v325_v53 }
 0x11e   :  { %781 = vmatpush.msra.mxu2 %v156_v30  ;;  %v1929_v30 = vld [vmem:[%s2305_s3 + $0x38] sm:$0xff] }
 0x11f   :  { %v476_v49 = vpop.permute.xlu0 %475  ;;  %717 = vmatpush.msra.mxu0 %v672_v47  ;;  %782 = vmatmul.f32.vlgmr.msra.gmra.mxu2 %v1850_v24 }
 0x120   :  { %487 = vst.msk [vmem:[#allocation2 + $0x1e8] sm:$0xff] %vm477_vm4, %v476_v49  ;;  %v479_v51 = vsel %vm477_vm4, %v1809_v6, %v476_v49  ;;  %1257 = vmatmul.msk.f32.gmra.mxu1 %vm219_vm13, %v1856_v50  ;;  %v636_v6 = vld [vmem:[%s2306_s4] sm:$0xff] }
 0x121   :  { %718 = vmatpush.msra.mxu0 %v670_v52  ;;  %642 = vperm.xlu1 %1318, %v636_v6  }
 0x123   :  { %719 = vmatpush.msra.mxu0 %v668_v54  ;;  %v514_v8 = vpop.permute.xlu1 %513  ;;  %v1874_v9 = vpop.permute.xlu2 %242 }
 0x124   :  { %v516_v10 = vsel %vm477_vm4, %v512_v45, %v514_v8  ;;  %525 = vst.msk [vmem:[#allocation2 + $0x1f8] sm:$0xf] %vm522_vm1, %v514_v8  ;;  %1262 = vmatmul.msk.f32.gmra.mxu3 %vm219_vm13, %v1881_v58  ;;  %vm2314_vm4 = vcmask 7168   ;;  %v1971_v15 = vld [vmem:[#allocation2 + $0x178] sm:$0xff] }
 0x125   :  { %524 = vst [vmem:[#allocation2 + $0x1f0] sm:$0xf] %v516_v10  ;;  %720 = vmatpush.msra.mxu0 %v666_v20  ;;  %vm2315_vm5 = vmmov %vm2314_vm4 }
 0x126   :  { %255 = vst.msk [vmem:[#allocation2 + $0x150] sm:$0xf] %vm252_vm9, %v1874_v9 }
 0x127   :  { %v417_v57 = vpop.permute.xlu0 %416  ;;  %721 = vmatpush.msra.mxu0 %v664_v56  ;;  %785 = vmatmul.f32.gmra.mxu2 %v1871_v55  ;;  %v1904_v12 = vld [vmem:[#allocation2 + $0x1e8] sm:$0xff] }
 0x128   :  { %1258 = vmatmul.msk.f32.gmra.mxu1 %vm219_vm13, %v1881_v58 }
 0x129   :  { %722 = vmatpush.msra.mxu0 %v662_v21 }
 0x12b   :  { %723 = vmatpush.msra.mxu0 %v660_v25  ;;  %v455_v59 = vpop.permute.xlu1 %454  ;;  %v1902_v13 = vld [vmem:[#allocation2 + $0x1f8] sm:$0xff]  ;;  %v1907_v18 = vpop.permute.xlu2 %577 }
 0x12c   :  { %v459_v62 = vsel %vm420_vm6, %v455_v59, %v1813_v27  ;;  %v983_v0 = vld [vmem:[#allocation2 + $0x1f0] sm:$0xff]  ;;  %724 = vmatmul.f32.vlgmr.msra.gmra.mxu0 %v1850_v24  ;;  %589 = vst.msk [vmem:[#allocation2 + $0x228] sm:$0xff] %vm579_vm3, %v1907_v18  ;;  %v1924_v27 = vld [vmem:[%s2305_s3 + $0x30] sm:$0xff]  ;;  %1263 = vmatmul.msk.f32.gmra.mxu3 %vm219_vm13, %v1929_v30 }
 0x12d   :  { %1051 = vmatpush.msrb.mxu0 %v1883_v61  ;;  %467 = vst [vmem:[#allocation2 + $0x1d0] sm:$0xf] %v459_v62  ;;  %995 = vmatpush.msrb.mxu1 %v983_v0  ;;  %v963_v48 = vld [vmem:[#allocation2 + $0x150] sm:$0xff] }
 0x12f   :  { %1052 = vmatpush.msrb.mxu0 %v1898_v7  ;;  %v340_v11 = vpop.permute.xlu0 %339  ;;  %996 = vmatpush.msrb.mxu1 %v479_v51 }
 0x130   :  { %788 = vmatmul.f32.gmra.mxu2 %v1893_v4  ;;  %353 = vst.msk [vmem:[#allocation2 + $0x180] sm:$0xff] %vm350_vm7, %v340_v11  ;;  %1259 = vmatmul.msk.f32.gmra.mxu1 %vm219_vm13, %v1929_v30  ;;  %vm2317_vm7 = vcmask 1047680  }
 0x131   :  { %1053 = vmatpush.msrb.mxu0 %v1902_v13 }
 0x133   :  { %1054 = vmatpush.msrb.mxu0 %v1904_v12  ;;  %v419_v22 = vpop.permute.xlu1 %418  ;;  %v193_v33 = vpop.permute.xlu2 %192  ;;  %v990_v52 = vld [vmem:[#allocation2 + $0x228] sm:$0xff] }
 0x134   :  { %v422_v23 = vsel %vm420_vm6, %v417_v57, %v419_v22  ;;  %430 = vst.msk [vmem:[#allocation2 + $0x1c8] sm:$0xff] %vm420_vm6, %v419_v22  ;;  %v979_v17 = vld [vmem:[#allocation2 + $0x1d0] sm:$0xff]  ;;  %727 = vmatmul.f32.gmra.mxu0 %v1871_v55  ;;  %vm2316_vm6 = vcmask 1047672  }
 0x135   :  { %1055 = vmatpush.msrb.mxu0 %v1913_v19  ;;  %997 = vmatpush.msrb.mxu1 %v979_v17  ;;  %205 = vst.msk [vmem:[#allocation2 + $0x130] sm:$0xf] %vm202_vm15, %v193_v33 }
 0x137   :  { %v342_v32 = vpop.permute.xlu0 %341  ;;  %998 = vmatpush.msrb.mxu1 %v422_v23  ;;  %v969_v41 = vld [vmem:[#allocation2 + $0x180] sm:$0xff] }
 0x138   :  { %791 = vmatmul.f32.gmra.mxu2 %v1924_v27  ;;  %v1939_v37 = vsel %vm2314_vm4, %v340_v11, %v342_v32 }
 0x139   :  { %999 = vmatpush.msrb.mxu1 %v975_v31 }
 0x13b   :  { %v381_v34 = vpop.permute.xlu1 %380  ;;  %v1944_v40 = vld [vmem:[#allocation2 + $0x1c8] sm:$0xff]  ;;  %1000 = vmatpush.msrb.mxu1 %v1659_v63  ;;  %v195_v43 = vpop.permute.xlu2 %194 }
 0x13c   :  { %v383_v1 = vsel %vm2315_vm5, %v1821_v39, %v381_v34  ;;  %1056 = vmatpush.msrb.mxu0 %v1944_v40  ;;  %v197_v63 = vsel %vm155_vm2, %v193_v33, %v195_v43  ;;  %v639_v39 = vld [vmem:[%s2306_s4 + $0x18] sm:$0xff] }
 0x13d   :  { %392 = vst [vmem:[#allocation2 + $0x198] sm:$0xf] %v383_v1  ;;  %1001 = vmatpush.msrb.mxu1 %v971_v38  ;;  %730 = vmatmul.f32.gmra.mxu0 %v1893_v4  ;;  %v959_v20 = vld [vmem:[#allocation2 + $0x130] sm:$0xff] }
 0x13e   :  { %1057 = vmatpush.msrb.mxu0 %v1947_v28  ;;  %206 = vst [vmem:[#allocation2 + $0x138] sm:$0xf] %v197_v63  ;;  %657 = vperm.xlu1 %1318, %v639_v39  }
 0x13f   :  { %v614_v42 = vpop.permute.xlu0 %613  ;;  %1002 = vmatpush.msrb.mxu1 %v969_v41 }
 0x140   :  { %1058 = vmatpush.msrb.mxu0 %v1649_v60 }
 0x141   :  { %1003 = vmatpush.msrb.mxu1 %v967_v14 }
 0x143   :  { %v282_v44 = vpop.permute.xlu1 %281 }
 0x144   :  { %295 = vst.msk [vmem:[#allocation2 + $0x160] sm:$0xff] %vm2316_vm6, %v282_v44  ;;  %v1960_v45 = vld [vmem:[#allocation2 + $0x198] sm:$0xff] }
 0x145   :  { %1059 = vmatpush.msrb.mxu0 %v1960_v45 }
 0x146   :  { %733 = vmatmul.f32.gmra.mxu0 %v1924_v27 }
 0x147   :  { %v284_v29 = vpop.permute.xlu0 %283  ;;  %1060 = vmatpush.msrb.mxu0 %v1939_v37 }
 0x148   :  { %v1969_v35 = vsel %vm285_vm10, %v282_v44, %v284_v29 }
 0x149   :  { %1061 = vmatpush.msrb.mxu0 %v1971_v15 }
 0x14b   :  { %v616_v46 = vpop.permute.xlu1 %615  ;;  %v965_v16 = vld [vmem:[#allocation2 + $0x160] sm:$0xff]  ;;  %1062 = vmatpush.msrb.mxu0 %v1969_v35 }
 0x14c   :  { %v618_v47 = vsel %vm579_vm3, %v614_v42, %v616_v46  ;;  %627 = vst.msk [vmem:[#allocation2 + $0x238] sm:$0xf] %vm624_vm8, %v616_v46  ;;  %1004 = vmatpush.msrb.mxu1 %v965_v16  ;;  %vm2318_vm8 = vcmask 1047688  }
 0x14d   :  { %626 = vst [vmem:[#allocation2 + $0x230] sm:$0xf] %v618_v47 }
 0x14e   :  { %1005 = vmatpush.msrb.mxu1 %v963_v48 }
 0x14f   :  { %v216_v49 = vpop.permute.xlu0 %215 }
 0x150   :  { %229 = vst.msk [vmem:[#allocation2 + $0x140] sm:$0xff] %vm2317_vm7, %v216_v49 }
 0x153   :  { %v576_v3 = vpop.permute.xlu1 %575  ;;  %v992_v51 = vld [vmem:[#allocation2 + $0x238] sm:$0xff] }
 0x154   :  { %v581_v53 = vsel %vm579_vm3, %v576_v3, %v1907_v18  ;;  %1094 = vmatpush.msrb.mxu2 %v992_v51  ;;  %v991_v54 = vld [vmem:[#allocation2 + $0x230] sm:$0xff] }
 0x155   :  { %1036 = vmatpush.msrb.mxu3 %v991_v54 }
 0x156   :  { %1095 = vmatpush.msrb.mxu2 %v990_v52 }
 0x157   :  { %v218_v8 = vpop.permute.xlu0 %217  ;;  %1037 = vmatpush.msrb.mxu3 %v581_v53  ;;  %v961_v10 = vld [vmem:[#allocation2 + $0x140] sm:$0xff]  ;;  %1274 = vmatmul.msk.f32.vlgmr.msrb.gmra.mxu2 %vm219_vm13, %v1836_v2 }
 0x158   :  { %v221_v56 = vsel %vm219_vm13, %v216_v49, %v218_v8  ;;  %1006 = vmatpush.msrb.mxu1 %v961_v10  ;;  %1270 = vmatmul.msk.f32.vlgmr.msrb.gmra.mxu3 %vm219_vm13, %v1836_v2 }
 0x159   :  { %1306 = vmatpush.msra.mxu3 %v992_v51 }
 0x15a   :  { %1007 = vmatpush.msrb.mxu1 %v959_v20 }
 0x15b   :  { %1307 = vmatpush.msra.mxu3 %v990_v52  ;;  %v245_v57 = vpop.permute.xlu1 %244 }
 0x15c   :  { %v247_v21 = vsel %vm219_vm13, %v1874_v9, %v245_v57  ;;  %v960_v9 = vld [vmem:[#allocation2 + $0x138] sm:$0xff] }
 0x15d   :  { %256 = vst [vmem:[#allocation2 + $0x158] sm:$0xf] %v247_v21 }
 0x15f   :  { %1275 = vmatmul.msk.f32.gmra.mxu2 %vm219_vm13, %v1856_v50  ;;  %v154_v25 = vpop.permute.xlu0 %153 }
 0x160   :  { %1271 = vmatmul.msk.f32.gmra.mxu3 %vm219_vm13, %v1856_v50 }
 0x163   :  { %v152_v59 = vpop.permute.xlu1 %151 }
 0x164   :  { %165 = vst.msk [vmem:[#allocation2 + $0x120] sm:$0xff] %vm2318_vm8, %v152_v59  ;;  %v157_v62 = vsel %vm155_vm2, %v152_v59, %v154_v25  ;;  %v964_v2 = vld [vmem:[#allocation2 + $0x158] sm:$0xff] }
 0x165   :  { %1063 = vmatpush.msrb.mxu0 %v964_v2 }
 0x167   :  { %1064 = vmatpush.msrb.mxu0 %v221_v56  ;;  %1276 = vmatmul.msk.f32.gmra.mxu2 %vm219_vm13, %v1881_v58 }
 0x168   :  { %1272 = vmatmul.msk.f32.gmra.mxu3 %vm219_vm13, %v1881_v58 }
 0x169   :  { %1065 = vmatpush.msrb.mxu0 %v960_v9 }
 0x16b   :  { %v957_v0 = vld [vmem:[#allocation2 + $0x120] sm:$0xff]  ;;  %1066 = vmatpush.msrb.mxu0 %v157_v62 }
 0x16c   :  { %1008 = vmatpush.msrb.mxu1 %v957_v0  ;;  %1067 = vmatmul.f32.vlgmr.msrb.gmra.mxu0 %v1850_v24 }
 0x16d   :  { %1009 = vmatmul.f32.vlgmr.msrb.gmra.mxu1 %v1850_v24 }
 0x16e   :  { %1290 = vmatpush.msra.mxu1 %v1883_v61 }
 0x170   :  { %1291 = vmatpush.msra.mxu1 %v1898_v7  ;;  %1273 = vmatmul.msk.f32.gmra.mxu3 %vm219_vm13, %v1929_v30 }
 0x172   :  { %1292 = vmatpush.msra.mxu1 %v1902_v13 }
 0x174   :  { %1293 = vmatpush.msra.mxu1 %v1904_v12  ;;  %1070 = vmatmul.f32.gmra.mxu0 %v1871_v55  ;;  %v2024_v5 = vpop.permute.xlu2 %647 }
 0x175   :  { %1012 = vmatmul.f32.gmra.mxu1 %v1871_v55 }
 0x176   :  { %1294 = vmatpush.msra.mxu1 %v1913_v19 }
 0x178   :  { %1295 = vmatpush.msra.mxu1 %v1944_v40  ;;  %1277 = vmatmul.msk.f32.vlgmr.msra.gmra.mxu3 %vm219_vm13, %v1929_v30 }
 0x17a   :  { %1296 = vmatpush.msra.mxu1 %v1947_v28 }
 0x17c   :  { %1297 = vmatpush.msra.mxu1 %v1649_v60  ;;  %1073 = vmatmul.f32.gmra.mxu0 %v1893_v4 }
 0x17d   :  { %1015 = vmatmul.f32.gmra.mxu1 %v1893_v4 }
 0x17e   :  { %1298 = vmatpush.msra.mxu1 %v1960_v45 }
 0x180   :  { %1299 = vmatpush.msra.mxu1 %v1939_v37  ;;  %v2030_v31 = vpop.permute.xlu0 %652 }
 0x182   :  { %1300 = vmatpush.msra.mxu1 %v1971_v15 }
 0x184   :  { %1301 = vmatpush.msra.mxu1 %v1969_v35 }
 0x185   :  { %1018 = vmatmul.f32.gmra.mxu1 %v1924_v27 }
 0x186   :  { %1302 = vmatpush.msra.mxu1 %v964_v2 }
 0x188   :  { %1303 = vmatpush.msra.mxu1 %v221_v56 }
 0x18a   :  { %1304 = vmatpush.msra.mxu1 %v960_v9 }
 0x18c   :  { %1305 = vmatpush.msra.mxu1 %v157_v62 }
 0x18d   :  { %1076 = vmatmul.f32.vlgmr.msra.gmra.mxu1 %v1924_v27 }
 0x193   :  { %v2021_v50 = vpop.permute.xlu1 %642 }
 0x195   :  { %v754_v61 = vpop.f32.mrf.mxu1 }
 0x197   :  { %v812_v60 = vpop.f32.mrf.mxu3 }
 0x19d   :  { %v757_v30 = vpop.f32.mrf.mxu1 }
 0x19f   :  { %v815_v6 = vpop.f32.mrf.mxu3 }
 0x1a2   :  { %v783_v24 = vpop.f32.mrf.mxu2 }
 0x1a3   :  { %v784_v55 = vadd.f32 %v783_v24, %v2021_v50 }
 0x1a5   :  { %v813_v58 = vadd.f32 %v812_v60, %v784_v55  ;;  %v760_v63 = vpop.f32.mrf.mxu1 }
 0x1a7   :  { %v1265_v4 = vmul.f32 -1.442695, %v813_v58  ;;  %v818_v32 = vpop.f32.mrf.mxu3 }
 0x1a9   :  { %1321 = vpow2.f32 %v1265_v4  ;;  %v725_v7 = vpop.f32.mrf.mxu0 }
 0x1aa   :  { %v786_v11 = vpop.f32.mrf.mxu2  ;;  %v726_v13 = vadd.f32 %v725_v7, %v2021_v50 }
 0x1ab   :  { %v787_v12 = vadd.f32 %v786_v11, %v2024_v5 }
 0x1ac   :  { %v755_v18 = vadd.f32 %v754_v61, %v726_v13 }
 0x1ad   :  { %v816_v19 = vadd.f32 %v815_v6, %v787_v12  ;;  %v763_v60 = vpop.f32.mrf.mxu1 }
 0x1ae   :  { %v1264_v23 = vmul.f32 -1.442695, %v755_v18 }
 0x1af   :  { %v1322_v22 = vpop.eup %1321  ;;  %v1267_v17 = vmul.f32 -1.442695, %v816_v19  ;;  %v821_v46 = vpop.f32.mrf.mxu3 }
 0x1b0   :  { %v2028_v27 = vadd.f32 1.0, %v1322_v22  ;;  %1323 = vpow2.f32 %v1264_v23  ;;  %v2037_v39 = vpop.permute.xlu1 %657 }
 0x1b1   :  { %v728_v33 = vpop.f32.mrf.mxu0 }
 0x1b2   :  { %1325 = vrcp.f32 %v2028_v27  ;;  %v729_v37 = vadd.f32 %v728_v33, %v2024_v5  ;;  %vm852_vm9 = vweird.f32 %v2028_v27  ;;  %v856_v21 = vand.u32 2147483647, %v2028_v27 }
 0x1b3   :  { %v789_v36 = vpop.f32.mrf.mxu2  ;;  %1327 = vpow2.f32 %v1267_v17  ;;  %v858_v25 = vand.u32 2147483648, %v2028_v27 }
 0x1b4   :  { %v790_v38 = vadd.f32 %v789_v36, %v2030_v31  ;;  %v758_v34 = vadd.f32 %v757_v30, %v729_v37  ;;  %vm2086_vm0 = vcmp.eq.f32.partialorder %v856_v21, 8.507059e+37 }
 0x1b5   :  { %v859_v7 = vor.u32 1.1754944e-38, %v858_v25 }
 0x1b6   :  { %v819_v40 = vadd.f32 %v818_v32, %v790_v38  ;;  %v1324_v28 = vpop.eup %1323  ;;  %v1266_v1 = vmul.f32 -1.442695, %v758_v34 }
 0x1b7   :  { %v830_v42 = vadd.f32 1.0, %v1324_v28 }
 0x1b8   :  { %v1269_v41 = vmul.f32 -1.442695, %v819_v40  ;;  %v2035_v14 = vpop.eup %1325  ;;  %1329 = vpow2.f32 %v1266_v1 }
 0x1b9   :  { %v1328_v43 = vpop.eup %1327  ;;  %v848_v44 = vmul.f32 %v2035_v14, %v2028_v27  ;;  %1331 = vrcp.f32 %v830_v42  ;;  %v841_v54 = vand.u32 2147483647, %v830_v42  ;;  %v843_v8 = vand.u32 2147483648, %v830_v42 }
 0x1ba   :  { %v2041_v45 = vadd.f32 1.0, %v1328_v43  ;;  %v731_v26 = vpop.f32.mrf.mxu0  ;;  %1333 = vpow2.f32 %v1269_v41  ;;  %vm853_vm10 = vweird.f32 %v2035_v14  ;;  %vm837_vm11 = vweird.f32 %v830_v42 }
 0x1bb   :  { %v792_v29 = vpop.f32.mrf.mxu2  ;;  %v732_v35 = vadd.f32 %v731_v26, %v2030_v31  ;;  %v849_v48 = vsub.f32 1.0, %v848_v44  ;;  %vm2070_vm12 = vmor %vm852_vm9, %vm853_vm10  ;;  %vm2078_vm15 = vcmp.eq.f32.partialorder %v841_v54, 8.507059e+37  ;;  %v844_v6 = vor.u32 1.1754944e-38, %v843_v8 }
 0x1bc   :  { %v793_v15 = vadd.f32 %v792_v29, %v2037_v39  ;;  %1335 = vrcp.f32 %v2041_v45  ;;  %v896_v0 = vand.u32 2147483648, %v2041_v45  ;;  %vm890_vm14 = vweird.f32 %v2041_v45 }
 0x1bd   :  { %v761_v16 = vadd.f32 %v760_v63, %v732_v35  ;;  %v850_v51 = vmul.f32 %v2035_v14, %v849_v48  ;;  %v894_v30 = vand.u32 2147483647, %v2041_v45 }
 0x1be   :  { %v1330_v47 = vpop.eup %1329  ;;  %v822_v3 = vadd.f32 %v821_v46, %v793_v15  ;;  %v897_v37 = vor.u32 1.1754944e-38, %v896_v0 }
 0x1bf   :  { %v1268_v49 = vmul.f32 -1.442695, %v761_v16  ;;  %v2047_v52 = vpop.eup %1331  ;;  %v2049_v53 = vadd.f32 1.0, %v1330_v47  ;;  %v851_v9 = vadd.f32 %v2035_v14, %v850_v51  ;;  %vm895_vm6 = vcmp.eq.f32.partialorder %v894_v30, 8.507059e+37 }
 0x1c0   :  { %v1334_v10 = vpop.eup %1333  ;;  %v833_v20 = vmul.f32 %v2047_v52, %v830_v42  ;;  %vm838_vm13 = vweird.f32 %v2047_v52 }
 0x1c1   :  { %1337 = vpow2.f32 %v1268_v49  ;;  %v2057_v57 = vadd.f32 1.0, %v1334_v10  ;;  %v855_v18 = vsel %vm2070_vm12, %v2035_v14, %v851_v9  ;;  %vm2095_vm3 = vmor %vm837_vm11, %vm838_vm13  ;;  %v881_v36 = vand.u32 2147483648, %v2049_v53 }
 0x1c2   :  { %v2054_v56 = vpop.eup %1335  ;;  %1339 = vrcp.f32 %v2049_v53  ;;  %v834_v2 = vsub.f32 1.0, %v833_v20  ;;  %vm875_vm1 = vweird.f32 %v2049_v53  ;;  %v879_v34 = vand.u32 2147483647, %v2049_v53 }
 0x1c3   :  { %v886_v59 = vmul.f32 %v2054_v56, %v2041_v45  ;;  %v734_v62 = vpop.f32.mrf.mxu0  ;;  %1341 = vtanh.f32 %v822_v3  ;;  %vm891_vm2 = vweird.f32 %v2054_v56  ;;  %v860_v40 = vsel %vm2086_vm0, %v859_v7, %v855_v18  ;;  %v941_v45 = vld [vmem:[%s2307_s2 + $0x8] sm:$0xff] }
 0x1c4   :  { %1343 = vrcp.f32 %v2057_v57  ;;  %v735_v58 = vadd.f32 %v734_v62, %v2037_v39  ;;  %v835_v61 = vmul.f32 %v2047_v52, %v834_v2  ;;  %vm2111_vm5 = vmor %vm890_vm14, %vm891_vm2  ;;  %v882_v63 = vor.u32 1.1754944e-38, %v881_v36 }
 0x1c5   :  { %v887_v55 = vsub.f32 1.0, %v886_v59  ;;  %vm928_vm7 = vweird.f32 %v2057_v57  ;;  %vm2132_vm9 = vcmp.eq.f32.partialorder %v879_v34, 8.507059e+37  ;;  %v932_v51 = vand.u32 2147483647, %v2057_v57 }
 0x1c6   :  { %v764_v13 = vadd.f32 %v763_v60, %v735_v58  ;;  %v836_v12 = vadd.f32 %v2047_v52, %v835_v61 }
 0x1c7   :  { %v1338_v11 = vpop.eup %1337  ;;  %v888_v23 = vmul.f32 %v2054_v56, %v887_v55  ;;  %vm933_vm14 = vcmp.eq.f32.partialorder %v932_v51, 8.507059e+37 }
 0x1c8   :  { %v1340_v22 = vpop.eup %1339  ;;  %v2092_v17 = vadd.f32 1.0, %v1338_v11  ;;  %1345 = vtanh.f32 %v764_v13  ;;  %v840_v14 = vsel %vm2095_vm3, %v2047_v52, %v836_v12  ;;  %v934_v52 = vand.u32 2147483648, %v2057_v57 }
 0x1c9   :  { %v1342_v32 = vpop.eup %1341  ;;  %v871_v33 = vmul.f32 %v1340_v22, %v2049_v53  ;;  %vm876_vm4 = vweird.f32 %v1340_v22  ;;  %v889_v42 = vadd.f32 %v2054_v56, %v888_v23  ;;  %v845_v29 = vsel %vm2078_vm15, %v844_v6, %v840_v14  ;;  %v940_v53 = vld [vmem:[%s2307_s2] sm:$0xff] }
 0x1ca   :  { %v1344_v38 = vpop.eup %1343  ;;  %1347 = vrcp.f32 %v2092_v17  ;;  %vm2126_vm8 = vmor %vm875_vm1, %vm876_vm4  ;;  %v945_v46 = vmul.f32 %v1342_v32, %v860_v40  ;;  %vm913_vm11 = vweird.f32 %v2092_v17  ;;  %v919_v2 = vand.u32 2147483648, %v2092_v17 }
 0x1cb   :  { %v872_v28 = vsub.f32 1.0, %v871_v33  ;;  %v924_v41 = vmul.f32 %v1344_v38, %v2057_v57  ;;  %v893_v15 = vsel %vm2111_vm5, %v2054_v56, %v889_v42  ;;  %vm929_vm10 = vweird.f32 %v1344_v38 }
 0x1cc   :  { %v898_v49 = vsel %vm895_vm6, %v897_v37, %v893_v15  ;;  %vm2150_vm12 = vmor %vm928_vm7, %vm929_vm10  ;;  %v917_v0 = vand.u32 2147483647, %v2092_v17  ;;  %v935_v60 = vor.u32 1.1754944e-38, %v934_v52  ;;  %v920_v61 = vor.u32 1.1754944e-38, %v919_v2 }
 0x1cd   :  { %v873_v43 = vmul.f32 %v1340_v22, %v872_v28  ;;  %v925_v44 = vsub.f32 1.0, %v924_v41  ;;  %v943_v54 = vmul.f32 %v941_v45, %v898_v49 }
 0x1ce   :  { %v1346_v16 = vpop.eup %1345  ;;  %vm918_vm0 = vcmp.eq.f32.partialorder %v917_v0, 8.507059e+37 }
 0x1cf   :  { %v926_v48 = vmul.f32 %v1344_v38, %v925_v44  ;;  %v874_v47 = vadd.f32 %v1340_v22, %v873_v43  ;;  %v944_v56 = vmul.f32 %v1346_v16, %v845_v29  ;;  %v947_v59 = vadd.f32 %v945_v46, %v943_v54 }
 0x1d0   :  { %v1348_v3 = vpop.eup %1347 }
 0x1d1   :  { %v909_v8 = vmul.f32 %v1348_v3, %v2092_v17  ;;  %v927_v10 = vadd.f32 %v1344_v38, %v926_v48  ;;  %v878_v20 = vsel %vm2126_vm8, %v1340_v22, %v874_v47  ;;  %vm914_vm13 = vweird.f32 %v1348_v3  ;;  %955 = vst [vmem:[%s2308_s6 + $0x8] sm:$0xff] %v947_v59 }
 0x1d2   :  { %v883_v25 = vsel %vm2132_vm9, %v882_v63, %v878_v20  ;;  %1349 = vtanh.f32 %v947_v59  ;;  %vm915_vm15 = vmor %vm913_vm11, %vm914_vm13 }
 0x1d3   :  { %v910_v62 = vsub.f32 1.0, %v909_v8  ;;  %v942_v9 = vmul.f32 %v940_v53, %v883_v25  ;;  %v931_v24 = vsel %vm2150_vm12, %v1344_v38, %v927_v10 }
 0x1d4   :  { %v936_v4 = vsel %vm933_vm14, %v935_v60, %v931_v24 }
 0x1d5   :  { %v911_v57 = vmul.f32 %v1348_v3, %v910_v62  ;;  %v946_v55 = vadd.f32 %v944_v56, %v942_v9 }
 0x1d7   :  { %v912_v58 = vadd.f32 %v1348_v3, %v911_v57  ;;  %1351 = vtanh.f32 %v946_v55  ;;  %954 = vst [vmem:[%s2308_s6] sm:$0xff] %v946_v55 }
 0x1d8   :  { %v1350_v7 = vpop.eup %1349 }
 0x1d9   :  { %v916_v6 = vsel %vm915_vm15, %v1348_v3, %v912_v58  ;;  %v951_v13 = vmul.f32 %v1350_v7, %v936_v4 }
 0x1da   :  { %v921_v11 = vsel %vm918_vm0, %v920_v61, %v916_v6  ;;  %v1097_v22 = vpop.f32.mrf.mxu2 }
 0x1db   :  { %953 = vst [vmem:[%s2309_s5 + $0x8] sm:$0xff] %v951_v13  ;;  %v1039_v19 = vpop.f32.mrf.mxu3 }
 0x1dd   :  { %v1352_v12 = vpop.eup %1351 }
 0x1de   :  { %v950_v18 = vmul.f32 %v1352_v12, %v921_v11 }
 0x1e0   :  { %952 = vst [vmem:[%s2309_s5] sm:$0xff] %v950_v18 }
 0x1e2   :  { %v1100_v34 = vpop.f32.mrf.mxu2 }
 0x1e3   :  { %v1042_v37 = vpop.f32.mrf.mxu3 }
 0x1e9   :  { %v1068_v23 = vpop.f32.mrf.mxu0 }
 0x1ea   :  { %v1010_v17 = vpop.f32.mrf.mxu1  ;;  %v1069_v27 = vadd.f32 %v1068_v23, %v2021_v50  ;;  %v1103_v15 = vpop.f32.mrf.mxu2 }
 0x1eb   :  { %v1011_v30 = vadd.f32 %v1010_v17, %v2021_v50  ;;  %v1045_v29 = vpop.f32.mrf.mxu3 }
 0x1ec   :  { %v1098_v32 = vadd.f32 %v1097_v22, %v1069_v27 }
 0x1ed   :  { %v1040_v33 = vadd.f32 %v1039_v19, %v1011_v30 }
 0x1ee   :  { %v1279_v36 = vmul.f32 -1.442695, %v1098_v32 }
 0x1ef   :  { %v1278_v38 = vmul.f32 -1.442695, %v1040_v33 }
 0x1f0   :  { %1353 = vpow2.f32 %v1279_v36 }
 0x1f1   :  { %1355 = vpow2.f32 %v1278_v38  ;;  %v1071_v40 = vpop.f32.mrf.mxu0 }
 0x1f2   :  { %v1013_v28 = vpop.f32.mrf.mxu1  ;;  %v1072_v1 = vadd.f32 %v1071_v40, %v2024_v5 }
 0x1f3   :  { %v1014_v41 = vadd.f32 %v1013_v28, %v2024_v5  ;;  %v1048_v56 = vpop.f32.mrf.mxu3 }
 0x1f4   :  { %v1101_v14 = vadd.f32 %v1100_v34, %v1072_v1 }
 0x1f5   :  { %v1043_v42 = vadd.f32 %v1042_v37, %v1014_v41 }
 0x1f6   :  { %v1354_v43 = vpop.eup %1353  ;;  %v1281_v63 = vmul.f32 -1.442695, %v1101_v14 }
 0x1f7   :  { %v1356_v44 = vpop.eup %1355  ;;  %v2178_v50 = vadd.f32 1.0, %v1354_v43  ;;  %v1280_v45 = vmul.f32 -1.442695, %v1043_v42 }
 0x1f8   :  { %v2180_v26 = vadd.f32 1.0, %v1356_v44  ;;  %1357 = vpow2.f32 %v1281_v63 }
 0x1f9   :  { %1359 = vrcp.f32 %v2178_v50  ;;  %v1074_v35 = vpop.f32.mrf.mxu0  ;;  %vm1137_vm3 = vweird.f32 %v2178_v50  ;;  %v1141_v13 = vand.u32 2147483647, %v2178_v50  ;;  %v1143_v12 = vand.u32 2147483648, %v2178_v50 }
 0x1fa   :  { %1361 = vrcp.f32 %v2180_v26  ;;  %v1016_v46 = vpop.f32.mrf.mxu1  ;;  %v1075_v5 = vadd.f32 %v1074_v35, %v2030_v31  ;;  %v1126_v0 = vand.u32 2147483647, %v2180_v26  ;;  %v1128_v60 = vand.u32 2147483648, %v2180_v26 }
 0x1fb   :  { %1363 = vpow2.f32 %v1280_v45  ;;  %v1017_v16 = vadd.f32 %v1016_v46, %v2030_v31  ;;  %vm1122_vm2 = vweird.f32 %v2180_v26  ;;  %v1106_v27 = vpop.f32.mrf.mxu3  ;;  %v1284_v46 = vld [vmem:[%s2307_s2 + $0x10] sm:$0xff]  ;;  %vm1142_vm0 = vcmp.eq.f32.partialorder %v1141_v13, 8.507059e+37 }
 0x1fc   :  { %v1104_v48 = vadd.f32 %v1103_v15, %v1075_v5  ;;  %vm2219_vm1 = vcmp.eq.f32.partialorder %v1126_v0, 8.507059e+37  ;;  %v1129_v22 = vor.u32 1.1754944e-38, %v1128_v60 }
 0x1fd   :  { %v1046_v47 = vadd.f32 %v1045_v29, %v1017_v16 }
 0x1fe   :  { %v1358_v49 = vpop.eup %1357  ;;  %v1283_v3 = vmul.f32 -1.442695, %v1104_v48 }
 0x1ff   :  { %v2186_v51 = vpop.eup %1359  ;;  %v2188_v52 = vadd.f32 1.0, %v1358_v49  ;;  %v1282_v53 = vmul.f32 -1.442695, %v1046_v47 }
 0x200   :  { %v2190_v54 = vpop.eup %1361  ;;  %1365 = vpow2.f32 %v1283_v3  ;;  %v1133_v21 = vmul.f32 %v2186_v51, %v2178_v50  ;;  %vm1138_vm9 = vweird.f32 %v2186_v51  ;;  %v1285_v50 = vld [vmem:[%s2307_s2 + $0x18] sm:$0xff] }
 0x201   :  { %v1364_v8 = vpop.eup %1363  ;;  %v1118_v10 = vmul.f32 %v2190_v54, %v2180_v26  ;;  %1367 = vrcp.f32 %v2188_v52  ;;  %v1181_v17 = vand.u32 2147483648, %v2188_v52  ;;  %vm1123_vm4 = vweird.f32 %v2190_v54  ;;  %vm2269_vm14 = vmor %vm1137_vm3, %vm1138_vm9 }
 0x202   :  { %v2195_v20 = vadd.f32 1.0, %v1364_v8  ;;  %1369 = vpow2.f32 %v1282_v53  ;;  %v1019_v31 = vpop.f32.mrf.mxu1  ;;  %v1134_v24 = vsub.f32 1.0, %v1133_v21  ;;  %v1179_v34 = vand.u32 2147483647, %v2188_v52  ;;  %vm2241_vm8 = vmor %vm1122_vm2, %vm1123_vm4 }
 0x203   :  { %v1020_v25 = vadd.f32 %v1019_v31, %v2037_v39  ;;  %v1119_v59 = vsub.f32 1.0, %v1118_v10  ;;  %vm1175_vm7 = vweird.f32 %v2188_v52  ;;  %v1182_v35 = vor.u32 1.1754944e-38, %v1181_v17 }
 0x204   :  { %1371 = vrcp.f32 %v2195_v20  ;;  %v1135_v30 = vmul.f32 %v2186_v51, %v1134_v24  ;;  %v1166_v37 = vand.u32 2147483648, %v2195_v20  ;;  %v1164_v38 = vand.u32 2147483647, %v2195_v20 }
 0x205   :  { %v1049_v58 = vadd.f32 %v1048_v56, %v1020_v25  ;;  %v1120_v4 = vmul.f32 %v2190_v54, %v1119_v59  ;;  %vm1160_vm10 = vweird.f32 %v2195_v20  ;;  %vm1180_vm15 = vcmp.eq.f32.partialorder %v1179_v34, 8.507059e+37 }
 0x206   :  { %v1366_v62 = vpop.eup %1365  ;;  %v1136_v42 = vadd.f32 %v2186_v51, %v1135_v30  ;;  %v1167_v29 = vor.u32 1.1754944e-38, %v1166_v37  ;;  %vm1165_vm13 = vcmp.eq.f32.partialorder %v1164_v38, 8.507059e+37  ;;  %v1144_v10 = vor.u32 1.1754944e-38, %v1143_v12 }
 0x207   :  { %v2201_v2 = vpop.eup %1367  ;;  %v2203_v9 = vadd.f32 1.0, %v1366_v62  ;;  %v1121_v33 = vadd.f32 %v2190_v54, %v1120_v4 }
 0x208   :  { %v1370_v57 = vpop.eup %1369  ;;  %v1171_v55 = vmul.f32 %v2201_v2, %v2188_v52  ;;  %vm1176_vm5 = vweird.f32 %v2201_v2  ;;  %v1140_v53 = vsel %vm2269_vm14, %v2186_v51, %v1136_v42 }
 0x209   :  { %v2209_v61 = vadd.f32 1.0, %v1370_v57  ;;  %1373 = vrcp.f32 %v2203_v9  ;;  %vm2250_vm11 = vmor %vm1175_vm7, %vm1176_vm5  ;;  %v1125_v44 = vsel %vm2241_vm8, %v2190_v54, %v1121_v33  ;;  %v1145_v59 = vsel %vm1142_vm0, %v1144_v10, %v1140_v53 }
 0x20a   :  { %v1372_v6 = vpop.eup %1371  ;;  %v1172_v7 = vsub.f32 1.0, %v1171_v55  ;;  %v1077_v11 = vpop.f32.mrf.mxu1  ;;  %v1130_v3 = vsel %vm2219_vm1, %v1129_v22, %v1125_v44  ;;  %vm1213_vm4 = vweird.f32 %v2203_v9 }
 0x20b   :  { %v1156_v18 = vmul.f32 %v1372_v6, %v2195_v20  ;;  %1375 = vrcp.f32 %v2209_v61  ;;  %v1078_v36 = vadd.f32 %v1077_v11, %v2037_v39  ;;  %vm1161_vm6 = vweird.f32 %v1372_v6 }
 0x20c   :  { %v1173_v23 = vmul.f32 %v2201_v2, %v1172_v7  ;;  %1377 = vtanh.f32 %v1049_v58  ;;  %vm1162_vm12 = vmor %vm1160_vm10, %vm1161_vm6  ;;  %v1204_v51 = vand.u32 2147483648, %v2209_v61  ;;  %vm1198_vm3 = vweird.f32 %v2209_v61 }
 0x20d   :  { %v1157_v32 = vsub.f32 1.0, %v1156_v18  ;;  %v1107_v1 = vadd.f32 %v1106_v27, %v1078_v36  ;;  %v1202_v60 = vand.u32 2147483647, %v2209_v61  ;;  %v1219_v58 = vand.u32 2147483648, %v2203_v9 }
 0x20e   :  { %v1174_v41 = vadd.f32 %v2201_v2, %v1173_v23  ;;  %v1205_v4 = vor.u32 1.1754944e-38, %v1204_v51 }
 0x20f   :  { %v2233_v40 = vpop.eup %1373  ;;  %v1158_v28 = vmul.f32 %v1372_v6, %v1157_v32  ;;  %1379 = vtanh.f32 %v1107_v1  ;;  %vm1203_vm6 = vcmp.eq.f32.partialorder %v1202_v60, 8.507059e+37  ;;  %v1220_v13 = vor.u32 1.1754944e-38, %v1219_v58 }
 0x210   :  { %v1209_v39 = vmul.f32 %v2233_v40, %v2203_v9  ;;  %v1178_v5 = vsel %vm2250_vm11, %v2201_v2, %v1174_v41  ;;  %vm1214_vm5 = vweird.f32 %v2233_v40 }
 0x211   :  { %v1376_v43 = vpop.eup %1375  ;;  %v1159_v45 = vadd.f32 %v1372_v6, %v1158_v28  ;;  %v1183_v20 = vsel %vm1180_vm15, %v1182_v35, %v1178_v5  ;;  %vm1215_vm7 = vmor %vm1213_vm4, %vm1214_vm5 }
 0x212   :  { %v1378_v26 = vpop.eup %1377  ;;  %v1194_v15 = vmul.f32 %v1376_v43, %v2209_v61  ;;  %v1210_v16 = vsub.f32 1.0, %v1209_v39  ;;  %vm1199_vm2 = vweird.f32 %v1376_v43  ;;  %v1229_v2 = vmul.f32 %v1285_v50, %v1183_v20 }
 0x213   :  { %v1163_v48 = vsel %vm1162_vm12, %v1372_v6, %v1159_v45  ;;  %v1230_v8 = vmul.f32 %v1378_v26, %v1130_v3  ;;  %vm1200_vm1 = vmor %vm1198_vm3, %vm1199_vm2  ;;  %v1217_v6 = vand.u32 2147483647, %v2203_v9 }
 0x214   :  { %v1195_v49 = vsub.f32 1.0, %v1194_v15  ;;  %v1168_v52 = vsel %vm1165_vm13, %v1167_v29, %v1163_v48  ;;  %v1211_v21 = vmul.f32 %v2233_v40, %v1210_v16 }
 0x215   :  { %v1228_v54 = vmul.f32 %v1284_v46, %v1168_v52  ;;  %v1380_v56 = vpop.eup %1379  ;;  %vm1218_vm8 = vcmp.eq.f32.partialorder %v1217_v6, 8.507059e+37 }
 0x216   :  { %v1196_v31 = vmul.f32 %v1376_v43, %v1195_v49  ;;  %v1231_v0 = vmul.f32 %v1380_v56, %v1145_v59  ;;  %v1212_v24 = vadd.f32 %v2233_v40, %v1211_v21 }
 0x217   :  { %v1232_v25 = vadd.f32 %v1230_v8, %v1228_v54 }
 0x218   :  { %v1197_v62 = vadd.f32 %v1376_v43, %v1196_v31  ;;  %v1233_v57 = vadd.f32 %v1231_v0, %v1229_v2  ;;  %v1216_v11 = vsel %vm1215_vm7, %v2233_v40, %v1212_v24 }
 0x219   :  { %1381 = vtanh.f32 %v1232_v25  ;;  %1288 = vst [vmem:[%s2308_s6 + $0x10] sm:$0xff] %v1232_v25  ;;  %v1221_v19 = vsel %vm1218_vm8, %v1220_v13, %v1216_v11 }
 0x21a   :  { %v1201_v55 = vsel %vm1200_vm1, %v1376_v43, %v1197_v62  ;;  %1383 = vtanh.f32 %v1233_v57  ;;  %1289 = vst [vmem:[%s2308_s6 + $0x18] sm:$0xff] %v1233_v57 }
 0x21b   :  { %v1206_v7 = vsel %vm1203_vm6, %v1205_v4, %v1201_v55 }
 0x21f   :  { %v1382_v61 = vpop.eup %1381 }
 0x220   :  { %v1236_v12 = vmul.f32 %v1382_v61, %v1206_v7  ;;  %v1384_v18 = vpop.eup %1383 }
 0x221   :  { %v1237_v22 = vmul.f32 %v1384_v18, %v1221_v19 }
 0x222   :  { %1286 = vst [vmem:[%s2309_s5 + $0x10] sm:$0xff] %v1236_v12 }
 0x223   :  { %1287 = vst [vmem:[%s2309_s5 + $0x18] sm:$0xff] %v1237_v22 }

</bundles_post_ra>
